<compile_context>
chip_gen: v7x
topology: tpu7x:2x2x1
jax: 0.10.0
libtpu: 0.0.40
codegen_flags: <defaults>
</compile_context>

<pallas_src>
import functools
import math

import jax
import jax.numpy as jnp
from jax.experimental import pallas as pl
from jax.experimental.pallas import tpu as pltpu


# ---------------------------------------------------------------------------
# Kernel
# ---------------------------------------------------------------------------

def _layer_norm(x, gamma, beta, eps=1e-5):
    mu = jnp.mean(x, axis=-1, keepdims=True)
    var = jnp.mean((x - mu) ** 2, axis=-1, keepdims=True)
    return (x - mu) * jax.lax.rsqrt(var + eps) * gamma + beta


def fused_encoder_kernel(x_ref, pe_ref,
                         wqkv_ref, wo_ref, w1_ref, w2_ref, vec_ref,
                         wfc_ref, bfc_ref,
                         out_ref,
                         act_ref,
                         *, num_heads, seq_len):
    # grid = (batch_block, layer); layer is the inner, sequential ("arbitrary") axis.
    l = pl.program_id(1)
    num_layers = pl.num_programs(1)

    M, D = act_ref.shape                 # M = Bt * S rows, resident in VMEM
    S = seq_len
    Bt = M // S
    H = num_heads
    dk = D // H
    F = w1_ref.shape[-1]
    inv_scale = 1.0 / math.sqrt(float(dk))

    # --- first layer step for this batch block: activation = x + positional enc ---
    @pl.when(l == 0)
    def _():
        act_ref[...] = x_ref[...].astype(jnp.float32) + pe_ref[...]

    x = act_ref[...]                     # (M, D) f32, VMEM-resident across layers

    # --- unpack the single packed per-layer vector block (one DMA per layer) -------
    vec = vec_ref[0]                     # (8, Wpad) f32
    bqkv = vec[0:1, :3 * D]
    bo   = vec[1:2, :D]
    g1   = vec[2:3, :D]
    be1  = vec[3:4, :D]
    b1   = vec[4:5, :F]
    b2   = vec[5:6, :D]
    g2   = vec[6:7, :D]
    be2  = vec[7:8, :D]

    # --- fused QKV projection: one lane-dense (M, D) @ (D, 3D) matmul --------------
    qkv = jnp.dot(x.astype(jnp.bfloat16), wqkv_ref[0],
                  preferred_element_type=jnp.float32) + bqkv          # (M, 3D) f32

    # --- per-(batch, head) scaled-dot-product attention (block-diagonal by nature) -
    # Static slices only; contexts are lane-concatenated so W_o is ONE big matmul.
    ctx_rows = []
    for b in range(Bt):
        r = b * S
        head_ctx = []
        for h in range(H):
            c = h * dk
            q_h = qkv[r:r + S, c:c + dk].astype(jnp.bfloat16)          # (S, dk)
            k_h = qkv[r:r + S, D + c:D + c + dk].astype(jnp.bfloat16)
            v_h = qkv[r:r + S, 2 * D + c:2 * D + c + dk].astype(jnp.bfloat16)
            s_h = jnp.einsum("qe,ke->qk", q_h, k_h,
                             preferred_element_type=jnp.float32) * inv_scale
            s_h = s_h - jnp.max(s_h, axis=-1, keepdims=True)
            p_h = jnp.exp(s_h)
            p_h = p_h * pl.reciprocal(jnp.sum(p_h, axis=-1, keepdims=True),
                                      approx=True)
            head_ctx.append(jnp.dot(p_h.astype(jnp.bfloat16), v_h,
                                    preferred_element_type=jnp.float32))
        ctx_rows.append(jnp.concatenate(head_ctx, axis=-1))            # (S, D)
    ctx = jnp.concatenate(ctx_rows, axis=0)                            # (M, D)

    # combine_heads + W_o as a single (M, D) @ (D, D) matmul.
    attn = jnp.dot(ctx.astype(jnp.bfloat16), wo_ref[0],
                   preferred_element_type=jnp.float32) + bo            # (M, D)

    # --- residual + LayerNorm 1 -----------------------------------------------------
    x1 = _layer_norm(x + attn, g1, be1)

    # --- position-wise feed forward ---------------------------------------------------
    h1 = jnp.dot(x1.astype(jnp.bfloat16), w1_ref[0],
                 preferred_element_type=jnp.float32) + b1
    h1 = jnp.maximum(h1, 0.0)
    ff = jnp.dot(h1.astype(jnp.bfloat16), w2_ref[0],
                 preferred_element_type=jnp.float32) + b2

    # --- residual + LayerNorm 2 -------------------------------------------------------
    x2 = _layer_norm(x1 + ff, g2, be2)
    act_ref[...] = x2

    # --- last layer: mean-pool per batch element, then classifier (mean is linear) ---
    @pl.when(l == num_layers - 1)
    def _():
        pooled = jnp.concatenate(
            [jnp.mean(x2[b * S:(b + 1) * S, :], axis=0, keepdims=True)
             for b in range(Bt)], axis=0)                              # (Bt, D)
        logits = jnp.dot(pooled, wfc_ref[...],
                         preferred_element_type=jnp.float32) + bfc_ref[...]
        out_ref[...] = logits.reshape(out_ref.shape).astype(out_ref.dtype)


# ---------------------------------------------------------------------------
# Wrapper: one pallas_call for the whole forward pass
# ---------------------------------------------------------------------------

def _round_up(v, m):
    return ((v + m - 1) // m) * m


def _pick_batch_block(B, S, target_rows=256):
    """Largest divisor Bt of B with Bt*S <= target rows and sublane-aligned blocks."""
    best = None
    for cand in range(1, B + 1):
        if B % cand:
            continue
        rows = cand * S
        if rows % 8 != 0 and cand != B:      # block rows must be 8-aligned unless full
            continue
        if rows > target_rows and best is not None:
            break
        best = cand
    return best if best is not None else B


def encoder_net_forward(x, params, *, num_heads):
    B, S, D = x.shape
    L = params["wqkv"].shape[0]
    F = params["w1"].shape[-1]
    C = params["wfc"].shape[1]
    Wp = params["vec"].shape[-1]

    Bt = _pick_batch_block(B, S)
    M = Bt * S

    # Wrapper-side layout plumbing (never in-kernel): rows flattened, PE tiled per block.
    x2d = x.reshape(B * S, D)
    pe2d = jnp.tile(params["pe"][:S], (Bt, 1))          # (M, D)

    kernel = functools.partial(fused_encoder_kernel, num_heads=num_heads, seq_len=S)

    # Double-buffered per-layer weights (bf16) + packed vectors + resident activations,
    # capped at 64 MiB so the same tiling stays safe on v7x's smaller VMEM.
    per_layer_w_bytes = 2 * (D * 3 * D + D * D + 2 * D * F) + 8 * Wp * 4
    vmem_limit = int(min(max(32 * 1024 * 1024,
                             4 * per_layer_w_bytes + 8 * M * D * 4 + (8 << 20)),
                         64 * 1024 * 1024))

    out = pl.pallas_call(
        kernel,
        out_shape=jax.ShapeDtypeStruct((B, 1, C), jnp.float32),
        grid_spec=pltpu.PrefetchScalarGridSpec(
            num_scalar_prefetch=0,
            grid=(B // Bt, L),
            in_specs=[
                pl.BlockSpec((M, D), lambda b, l: (b, 0)),             # x rows
                pl.BlockSpec((M, D), lambda b, l: (0, 0)),             # positional enc
                pl.BlockSpec((1, D, 3 * D), lambda b, l: (l, 0, 0)),   # W_qkv (bf16)
                pl.BlockSpec((1, D, D), lambda b, l: (l, 0, 0)),       # W_o   (bf16)
                pl.BlockSpec((1, D, F), lambda b, l: (l, 0, 0)),       # W_ff1 (bf16)
                pl.BlockSpec((1, F, D), lambda b, l: (l, 0, 0)),       # W_ff2 (bf16)
                pl.BlockSpec((1, 8, Wp), lambda b, l: (l, 0, 0)),      # packed vectors
                pl.BlockSpec((D, C), lambda b, l: (0, 0)),             # classifier W
                pl.BlockSpec((1, C), lambda b, l: (0, 0)),             # classifier b
            ],
            out_specs=pl.BlockSpec((Bt, 1, C), lambda b, l: (b, 0, 0)),
            scratch_shapes=[pltpu.VMEM((M, D), jnp.float32)],          # resident act
        ),
        compiler_params=pltpu.CompilerParams(
            dimension_semantics=("parallel", "arbitrary"),
            vmem_limit_bytes=vmem_limit),
    )(x2d, pe2d, params["wqkv"], params["wo"], params["w1"], params["w2"],
      params["vec"], params["wfc"], params["bfc"])
    return out.reshape(B, C)


# ---------------------------------------------------------------------------
# Parameter construction (deterministic, synthetic)
# ---------------------------------------------------------------------------

def make_positional_encoding(d_model, max_seq_length):
    pos = jnp.arange(max_seq_length, dtype=jnp.float32)[:, None]
    div = jnp.exp(jnp.arange(0, d_model, 2, dtype=jnp.float32)
                  * (-9.210340371976184 / d_model))
    pe = jnp.zeros((max_seq_length, d_model), jnp.float32)
    pe = pe.at[:, 0::2].set(jnp.sin(pos * div))
    pe = pe.at[:, 1::2].set(jnp.cos(pos * div))
    return pe


def init_params(key, d_model, num_heads, num_layers, d_ff, num_classes,
                max_seq_length):
    del num_heads  # head split is purely a view of the fused projection columns
    D, F = d_model, d_ff
    Wp = _round_up(max(3 * D, F, D), 128)

    def linear(k, fan_in, fan_out):
        kw, kb = jax.random.split(k)
        w = jax.random.normal(kw, (fan_in, fan_out), jnp.float32) * 0.02
        b = jax.random.normal(kb, (fan_out,), jnp.float32) * 0.02
        return w, b

    def pad_row(v):
        return jnp.pad(v, (0, Wp - v.shape[0]))

    wqkv_l, wo_l, w1_l, w2_l, vec_l = [], [], [], [], []
    keys = jax.random.split(key, num_layers * 6 + 1)
    for li in range(num_layers):
        k = keys[li * 6:(li + 1) * 6]
        wq, bq = linear(k[0], D, D)
        wk, bk = linear(k[1], D, D)
        wv, bv = linear(k[2], D, D)
        wo, bo = linear(k[3], D, D)
        w1, b1 = linear(k[4], D, F)
        w2, b2 = linear(k[5], F, D)
        g1 = jnp.ones((D,), jnp.float32); be1 = jnp.zeros((D,), jnp.float32)
        g2 = jnp.ones((D,), jnp.float32); be2 = jnp.zeros((D,), jnp.float32)

        # Weights stored (in, out); Q|K|V fused along the output axis; all bf16 in HBM.
        wqkv_l.append(jnp.concatenate([wq, wk, wv], axis=1).astype(jnp.bfloat16))
        wo_l.append(wo.astype(jnp.bfloat16))
        w1_l.append(w1.astype(jnp.bfloat16))
        w2_l.append(w2.astype(jnp.bfloat16))
        # All tiny per-layer vectors packed into a single (8, Wp) f32 block.
        vec_l.append(jnp.stack([pad_row(jnp.concatenate([bq, bk, bv])),
                                pad_row(bo), pad_row(g1), pad_row(be1),
                                pad_row(b1), pad_row(b2), pad_row(g2), pad_row(be2)]))

    wfc, bfc = linear(keys[-1], D, num_classes)
    return {
        "wqkv": jnp.stack(wqkv_l),
        "wo":   jnp.stack(wo_l),
        "w1":   jnp.stack(w1_l),
        "w2":   jnp.stack(w2_l),
        "vec":  jnp.stack(vec_l),
        "pe":   make_positional_encoding(D, max_seq_length),
        "wfc":  wfc,
        "bfc":  bfc[None, :],
    }


# ---------------------------------------------------------------------------

if __name__ == "__main__":
    # Small, forward-consistent shapes.
    B, S = 2, 8
    d_model, num_heads, num_layers, d_ff = 32, 4, 2, 64
    num_classes, max_seq_length = 8, 16

    key = jax.random.PRNGKey(0)
    k_param, k_x = jax.random.split(key)
    params = init_params(k_param, d_model, num_heads, num_layers, d_ff,
                         num_classes, max_seq_length)
    x = jax.random.normal(k_x, (B, S, d_model), jnp.float32)

    fwd = jax.jit(functools.partial(encoder_net_forward, num_heads=num_heads))
    out = fwd(x, params)
    jax.block_until_ready(out)
    assert out.shape == (B, num_classes)
    print("KERNEL_OK")
</pallas_src>

<mosaic_0001>
module attributes {stable_mosaic.version = 11 : i64} {
  func.func @fused_encoder_kernel(%arg0: i32, %arg1: i32, %arg2: memref<16x32xf32, #tpu.memory_space<vmem>>, %arg3: memref<16x32xf32, #tpu.memory_space<vmem>>, %arg4: memref<1x32x96xbf16, #tpu.memory_space<vmem>>, %arg5: memref<1x32x32xbf16, #tpu.memory_space<vmem>>, %arg6: memref<1x32x64xbf16, #tpu.memory_space<vmem>>, %arg7: memref<1x64x32xbf16, #tpu.memory_space<vmem>>, %arg8: memref<1x8x128xf32, #tpu.memory_space<vmem>>, %arg9: memref<32x8xf32, #tpu.memory_space<vmem>>, %arg10: memref<1x8xf32, #tpu.memory_space<vmem>>, %arg11: memref<2x1x8xf32, #tpu.memory_space<vmem>>, %arg12: memref<16x32xf32, #tpu.memory_space<vmem>>) attributes {dimension_semantics = [#tpu.dimension_semantics<parallel>, #tpu.dimension_semantics<arbitrary>], iteration_bounds = array<i64: 1, 2>, scalar_prefetch = 0 : i64, scratch_operands = 1 : i64, tpu.core_type = #tpu.core_type<tc>, window_params = [{transform_indices = @transform_0, window_bounds = array<i64: 16, 32>}, {pipeline_mode = #tpu.pipeline_mode<synchronous>, transform_indices = @transform_1, window_bounds = array<i64: 16, 32>}, {transform_indices = @transform_2, window_bounds = array<i64: 1, 32, 96>}, {transform_indices = @transform_3, window_bounds = array<i64: 1, 32, 32>}, {transform_indices = @transform_4, window_bounds = array<i64: 1, 32, 64>}, {transform_indices = @transform_5, window_bounds = array<i64: 1, 64, 32>}, {transform_indices = @transform_6, window_bounds = array<i64: 1, 8, 128>}, {pipeline_mode = #tpu.pipeline_mode<synchronous>, transform_indices = @transform_7, window_bounds = array<i64: 32, 8>}, {pipeline_mode = #tpu.pipeline_mode<synchronous>, transform_indices = @transform_8, window_bounds = array<i64: 1, 8>}, {transform_indices = @transform_9, window_bounds = array<i64: 2, 1, 8>}]} {
    %c0_i32 = arith.constant 0 : i32
    %0 = arith.cmpi eq, %arg1, %c0_i32 : i32
    %1 = arith.extui %0 : i1 to i32
    %c0_i32_0 = arith.constant 0 : i32
    %2 = arith.cmpi ne, %1, %c0_i32_0 : i32
    scf.if %2 {
      %c0_74 = arith.constant 0 : index
      %c0_75 = arith.constant 0 : index
      %261 = vector.load %arg2[%c0_74, %c0_75] : memref<16x32xf32, #tpu.memory_space<vmem>>, vector<16x32xf32>
      %c0_76 = arith.constant 0 : index
      %c0_77 = arith.constant 0 : index
      %262 = vector.load %arg3[%c0_76, %c0_77] : memref<16x32xf32, #tpu.memory_space<vmem>>, vector<16x32xf32>
      %263 = arith.addf %261, %262 : vector<16x32xf32>
      %c0_78 = arith.constant 0 : index
      %c0_79 = arith.constant 0 : index
      %264 = vector.load %arg12[%c0_78, %c0_79] : memref<16x32xf32, #tpu.memory_space<vmem>>, vector<16x32xf32>
      tpu.vector_store %arg12[%c0_78, %c0_79], %263 {strides = array<i32>} : memref<16x32xf32, #tpu.memory_space<vmem>>, vector<16x32xf32>,
    } else {
    }
    %c0 = arith.constant 0 : index
    %c0_1 = arith.constant 0 : index
    %3 = vector.load %arg12[%c0, %c0_1] : memref<16x32xf32, #tpu.memory_space<vmem>>, vector<16x32xf32>
    %c0_2 = arith.constant 0 : index
    %c0_3 = arith.constant 0 : index
    %c0_4 = arith.constant 0 : index
    %4 = vector.load %arg8[%c0_2, %c0_3, %c0_4] : memref<1x8x128xf32, #tpu.memory_space<vmem>>, vector<1x8x128xf32>
    %5 = vector.shape_cast %4 : vector<1x8x128xf32> to vector<8x128xf32>
    %6 = vector.extract_strided_slice %5 {offsets = [0, 0], sizes = [1, 96], strides = [1, 1]} : vector<8x128xf32> to vector<1x96xf32>
    %7 = vector.extract_strided_slice %5 {offsets = [1, 0], sizes = [1, 32], strides = [1, 1]} : vector<8x128xf32> to vector<1x32xf32>
    %8 = vector.extract_strided_slice %5 {offsets = [2, 0], sizes = [1, 32], strides = [1, 1]} : vector<8x128xf32> to vector<1x32xf32>
    %9 = vector.extract_strided_slice %5 {offsets = [3, 0], sizes = [1, 32], strides = [1, 1]} : vector<8x128xf32> to vector<1x32xf32>
    %10 = vector.extract_strided_slice %5 {offsets = [4, 0], sizes = [1, 64], strides = [1, 1]} : vector<8x128xf32> to vector<1x64xf32>
    %11 = vector.extract_strided_slice %5 {offsets = [5, 0], sizes = [1, 32], strides = [1, 1]} : vector<8x128xf32> to vector<1x32xf32>
    %12 = vector.extract_strided_slice %5 {offsets = [6, 0], sizes = [1, 32], strides = [1, 1]} : vector<8x128xf32> to vector<1x32xf32>
    %13 = vector.extract_strided_slice %5 {offsets = [7, 0], sizes = [1, 32], strides = [1, 1]} : vector<8x128xf32> to vector<1x32xf32>
    %14 = arith.truncf %3 : vector<16x32xf32> to vector<16x32xbf16>
    %c0_5 = arith.constant 0 : index
    %c0_6 = arith.constant 0 : index
    %c0_7 = arith.constant 0 : index
    %15 = vector.load %arg4[%c0_5, %c0_6, %c0_7] : memref<1x32x96xbf16, #tpu.memory_space<vmem>>, vector<1x32x96xbf16>
    %16 = vector.shape_cast %15 : vector<1x32x96xbf16> to vector<32x96xbf16>
    %cst = arith.constant dense<0.000000e+00> : vector<16x96xf32>
    %17 = tpu.matmul %14, %16, %cst {dimension_numbers = #tpu.dot_dimension_numbers<[1], [0], [0], [1], [0, 0, 1, 1], [], []>} : vector<16x32xbf16>, vector<32x96xbf16>, vector<16x96xf32> -> vector<16x96xf32>
    %18 = vector.broadcast %6 : vector<1x96xf32> to vector<16x96xf32>
    %19 = arith.addf %17, %18 : vector<16x96xf32>
    %20 = vector.extract_strided_slice %19 {offsets = [0, 0], sizes = [8, 8], strides = [1, 1]} : vector<16x96xf32> to vector<8x8xf32>
    %21 = arith.truncf %20 : vector<8x8xf32> to vector<8x8xbf16>
    %22 = vector.extract_strided_slice %19 {offsets = [0, 32], sizes = [8, 8], strides = [1, 1]} : vector<16x96xf32> to vector<8x8xf32>
    %23 = arith.truncf %22 : vector<8x8xf32> to vector<8x8xbf16>
    %24 = vector.extract_strided_slice %19 {offsets = [0, 64], sizes = [8, 8], strides = [1, 1]} : vector<16x96xf32> to vector<8x8xf32>
    %25 = arith.truncf %24 : vector<8x8xf32> to vector<8x8xbf16>
    "tpu.trace_start"() <{level = 10 : i32, message = "qe,ke->qk"}> : () -> ()
    %cst_8 = arith.constant dense<0.000000e+00> : vector<8x8xf32>
    %26 = tpu.matmul %21, %23, %cst_8 {dimension_numbers = #tpu.dot_dimension_numbers<[1], [1], [0], [0], [0, 0, 1, 0], [], []>} : vector<8x8xbf16>, vector<8x8xbf16>, vector<8x8xf32> -> vector<8x8xf32>
    "tpu.trace_stop"() : () -> ()
    %cst_9 = arith.constant 0.353553385 : f32
    %27 = vector.broadcast %cst_9 : f32 to vector<8x8xf32>
    %28 = arith.mulf %26, %27 : vector<8x8xf32>
    %cst_10 = arith.constant dense<0xFF800000> : vector<8xf32>
    %29 = vector.multi_reduction <maximumf>, %28, %cst_10 [1] : vector<8x8xf32> to vector<8xf32>
    %30 = vector.shape_cast %29 : vector<8xf32> to vector<8x1xf32>
    %31 = vector.broadcast %30 : vector<8x1xf32> to vector<8x8xf32>
    %32 = arith.subf %28, %31 : vector<8x8xf32>
    %33 = math.exp %32 : vector<8x8xf32>
    %cst_11 = arith.constant dense<0.000000e+00> : vector<8xf32>
    %34 = vector.multi_reduction <add>, %33, %cst_11 [1] : vector<8x8xf32> to vector<8xf32>
    %35 = vector.shape_cast %34 : vector<8xf32> to vector<8x1xf32>
    %36 = tpu.reciprocal %35 {approx = true} : vector<8x1xf32> -> vector<8x1xf32>
    %37 = vector.broadcast %36 : vector<8x1xf32> to vector<8x8xf32>
    %38 = arith.mulf %33, %37 : vector<8x8xf32>
    %39 = arith.truncf %38 : vector<8x8xf32> to vector<8x8xbf16>
    %cst_12 = arith.constant dense<0.000000e+00> : vector<8x8xf32>
    %40 = tpu.matmul %39, %25, %cst_12 {dimension_numbers = #tpu.dot_dimension_numbers<[1], [0], [0], [1], [0, 0, 1, 1], [], []>} : vector<8x8xbf16>, vector<8x8xbf16>, vector<8x8xf32> -> vector<8x8xf32>
    %41 = vector.extract_strided_slice %19 {offsets = [0, 8], sizes = [8, 8], strides = [1, 1]} : vector<16x96xf32> to vector<8x8xf32>
    %42 = arith.truncf %41 : vector<8x8xf32> to vector<8x8xbf16>
    %43 = vector.extract_strided_slice %19 {offsets = [0, 40], sizes = [8, 8], strides = [1, 1]} : vector<16x96xf32> to vector<8x8xf32>
    %44 = arith.truncf %43 : vector<8x8xf32> to vector<8x8xbf16>
    %45 = vector.extract_strided_slice %19 {offsets = [0, 72], sizes = [8, 8], strides = [1, 1]} : vector<16x96xf32> to vector<8x8xf32>
    %46 = arith.truncf %45 : vector<8x8xf32> to vector<8x8xbf16>
    "tpu.trace_start"() <{level = 10 : i32, message = "qe,ke->qk"}> : () -> ()
    %cst_13 = arith.constant dense<0.000000e+00> : vector<8x8xf32>
    %47 = tpu.matmul %42, %44, %cst_13 {dimension_numbers = #tpu.dot_dimension_numbers<[1], [1], [0], [0], [0, 0, 1, 0], [], []>} : vector<8x8xbf16>, vector<8x8xbf16>, vector<8x8xf32> -> vector<8x8xf32>
    "tpu.trace_stop"() : () -> ()
    %cst_14 = arith.constant 0.353553385 : f32
    %48 = vector.broadcast %cst_14 : f32 to vector<8x8xf32>
    %49 = arith.mulf %47, %48 : vector<8x8xf32>
    %cst_15 = arith.constant dense<0xFF800000> : vector<8xf32>
    %50 = vector.multi_reduction <maximumf>, %49, %cst_15 [1] : vector<8x8xf32> to vector<8xf32>
    %51 = vector.shape_cast %50 : vector<8xf32> to vector<8x1xf32>
    %52 = vector.broadcast %51 : vector<8x1xf32> to vector<8x8xf32>
    %53 = arith.subf %49, %52 : vector<8x8xf32>
    %54 = math.exp %53 : vector<8x8xf32>
    %cst_16 = arith.constant dense<0.000000e+00> : vector<8xf32>
    %55 = vector.multi_reduction <add>, %54, %cst_16 [1] : vector<8x8xf32> to vector<8xf32>
    %56 = vector.shape_cast %55 : vector<8xf32> to vector<8x1xf32>
    %57 = tpu.reciprocal %56 {approx = true} : vector<8x1xf32> -> vector<8x1xf32>
    %58 = vector.broadcast %57 : vector<8x1xf32> to vector<8x8xf32>
    %59 = arith.mulf %54, %58 : vector<8x8xf32>
    %60 = arith.truncf %59 : vector<8x8xf32> to vector<8x8xbf16>
    %cst_17 = arith.constant dense<0.000000e+00> : vector<8x8xf32>
    %61 = tpu.matmul %60, %46, %cst_17 {dimension_numbers = #tpu.dot_dimension_numbers<[1], [0], [0], [1], [0, 0, 1, 1], [], []>} : vector<8x8xbf16>, vector<8x8xbf16>, vector<8x8xf32> -> vector<8x8xf32>
    %62 = vector.extract_strided_slice %19 {offsets = [0, 16], sizes = [8, 8], strides = [1, 1]} : vector<16x96xf32> to vector<8x8xf32>
    %63 = arith.truncf %62 : vector<8x8xf32> to vector<8x8xbf16>
    %64 = vector.extract_strided_slice %19 {offsets = [0, 48], sizes = [8, 8], strides = [1, 1]} : vector<16x96xf32> to vector<8x8xf32>
    %65 = arith.truncf %64 : vector<8x8xf32> to vector<8x8xbf16>
    %66 = vector.extract_strided_slice %19 {offsets = [0, 80], sizes = [8, 8], strides = [1, 1]} : vector<16x96xf32> to vector<8x8xf32>
    %67 = arith.truncf %66 : vector<8x8xf32> to vector<8x8xbf16>
    "tpu.trace_start"() <{level = 10 : i32, message = "qe,ke->qk"}> : () -> ()
    %cst_18 = arith.constant dense<0.000000e+00> : vector<8x8xf32>
    %68 = tpu.matmul %63, %65, %cst_18 {dimension_numbers = #tpu.dot_dimension_numbers<[1], [1], [0], [0], [0, 0, 1, 0], [], []>} : vector<8x8xbf16>, vector<8x8xbf16>, vector<8x8xf32> -> vector<8x8xf32>
    "tpu.trace_stop"() : () -> ()
    %cst_19 = arith.constant 0.353553385 : f32
    %69 = vector.broadcast %cst_19 : f32 to vector<8x8xf32>
    %70 = arith.mulf %68, %69 : vector<8x8xf32>
    %cst_20 = arith.constant dense<0xFF800000> : vector<8xf32>
    %71 = vector.multi_reduction <maximumf>, %70, %cst_20 [1] : vector<8x8xf32> to vector<8xf32>
    %72 = vector.shape_cast %71 : vector<8xf32> to vector<8x1xf32>
    %73 = vector.broadcast %72 : vector<8x1xf32> to vector<8x8xf32>
    %74 = arith.subf %70, %73 : vector<8x8xf32>
    %75 = math.exp %74 : vector<8x8xf32>
    %cst_21 = arith.constant dense<0.000000e+00> : vector<8xf32>
    %76 = vector.multi_reduction <add>, %75, %cst_21 [1] : vector<8x8xf32> to vector<8xf32>
    %77 = vector.shape_cast %76 : vector<8xf32> to vector<8x1xf32>
    %78 = tpu.reciprocal %77 {approx = true} : vector<8x1xf32> -> vector<8x1xf32>
    %79 = vector.broadcast %78 : vector<8x1xf32> to vector<8x8xf32>
    %80 = arith.mulf %75, %79 : vector<8x8xf32>
    %81 = arith.truncf %80 : vector<8x8xf32> to vector<8x8xbf16>
    %cst_22 = arith.constant dense<0.000000e+00> : vector<8x8xf32>
    %82 = tpu.matmul %81, %67, %cst_22 {dimension_numbers = #tpu.dot_dimension_numbers<[1], [0], [0], [1], [0, 0, 1, 1], [], []>} : vector<8x8xbf16>, vector<8x8xbf16>, vector<8x8xf32> -> vector<8x8xf32>
    %83 = vector.extract_strided_slice %19 {offsets = [0, 24], sizes = [8, 8], strides = [1, 1]} : vector<16x96xf32> to vector<8x8xf32>
    %84 = arith.truncf %83 : vector<8x8xf32> to vector<8x8xbf16>
    %85 = vector.extract_strided_slice %19 {offsets = [0, 56], sizes = [8, 8], strides = [1, 1]} : vector<16x96xf32> to vector<8x8xf32>
    %86 = arith.truncf %85 : vector<8x8xf32> to vector<8x8xbf16>
    %87 = vector.extract_strided_slice %19 {offsets = [0, 88], sizes = [8, 8], strides = [1, 1]} : vector<16x96xf32> to vector<8x8xf32>
    %88 = arith.truncf %87 : vector<8x8xf32> to vector<8x8xbf16>
    "tpu.trace_start"() <{level = 10 : i32, message = "qe,ke->qk"}> : () -> ()
    %cst_23 = arith.constant dense<0.000000e+00> : vector<8x8xf32>
    %89 = tpu.matmul %84, %86, %cst_23 {dimension_numbers = #tpu.dot_dimension_numbers<[1], [1], [0], [0], [0, 0, 1, 0], [], []>} : vector<8x8xbf16>, vector<8x8xbf16>, vector<8x8xf32> -> vector<8x8xf32>
    "tpu.trace_stop"() : () -> ()
    %cst_24 = arith.constant 0.353553385 : f32
    %90 = vector.broadcast %cst_24 : f32 to vector<8x8xf32>
    %91 = arith.mulf %89, %90 : vector<8x8xf32>
    %cst_25 = arith.constant dense<0xFF800000> : vector<8xf32>
    %92 = vector.multi_reduction <maximumf>, %91, %cst_25 [1] : vector<8x8xf32> to vector<8xf32>
    %93 = vector.shape_cast %92 : vector<8xf32> to vector<8x1xf32>
    %94 = vector.broadcast %93 : vector<8x1xf32> to vector<8x8xf32>
    %95 = arith.subf %91, %94 : vector<8x8xf32>
    %96 = math.exp %95 : vector<8x8xf32>
    %cst_26 = arith.constant dense<0.000000e+00> : vector<8xf32>
    %97 = vector.multi_reduction <add>, %96, %cst_26 [1] : vector<8x8xf32> to vector<8xf32>
    %98 = vector.shape_cast %97 : vector<8xf32> to vector<8x1xf32>
    %99 = tpu.reciprocal %98 {approx = true} : vector<8x1xf32> -> vector<8x1xf32>
    %100 = vector.broadcast %99 : vector<8x1xf32> to vector<8x8xf32>
    %101 = arith.mulf %96, %100 : vector<8x8xf32>
    %102 = arith.truncf %101 : vector<8x8xf32> to vector<8x8xbf16>
    %cst_27 = arith.constant dense<0.000000e+00> : vector<8x8xf32>
    %103 = tpu.matmul %102, %88, %cst_27 {dimension_numbers = #tpu.dot_dimension_numbers<[1], [0], [0], [1], [0, 0, 1, 1], [], []>} : vector<8x8xbf16>, vector<8x8xbf16>, vector<8x8xf32> -> vector<8x8xf32>
    %104 = tpu.concatenate %40, %61, %82, %103 in 1 : vector<8x8xf32>, vector<8x8xf32>, vector<8x8xf32>, vector<8x8xf32> -> vector<8x32xf32>
    %105 = vector.extract_strided_slice %19 {offsets = [8, 0], sizes = [8, 8], strides = [1, 1]} : vector<16x96xf32> to vector<8x8xf32>
    %106 = arith.truncf %105 : vector<8x8xf32> to vector<8x8xbf16>
    %107 = vector.extract_strided_slice %19 {offsets = [8, 32], sizes = [8, 8], strides = [1, 1]} : vector<16x96xf32> to vector<8x8xf32>
    %108 = arith.truncf %107 : vector<8x8xf32> to vector<8x8xbf16>
    %109 = vector.extract_strided_slice %19 {offsets = [8, 64], sizes = [8, 8], strides = [1, 1]} : vector<16x96xf32> to vector<8x8xf32>
    %110 = arith.truncf %109 : vector<8x8xf32> to vector<8x8xbf16>
    "tpu.trace_start"() <{level = 10 : i32, message = "qe,ke->qk"}> : () -> ()
    %cst_28 = arith.constant dense<0.000000e+00> : vector<8x8xf32>
    %111 = tpu.matmul %106, %108, %cst_28 {dimension_numbers = #tpu.dot_dimension_numbers<[1], [1], [0], [0], [0, 0, 1, 0], [], []>} : vector<8x8xbf16>, vector<8x8xbf16>, vector<8x8xf32> -> vector<8x8xf32>
    "tpu.trace_stop"() : () -> ()
    %cst_29 = arith.constant 0.353553385 : f32
    %112 = vector.broadcast %cst_29 : f32 to vector<8x8xf32>
    %113 = arith.mulf %111, %112 : vector<8x8xf32>
    %cst_30 = arith.constant dense<0xFF800000> : vector<8xf32>
    %114 = vector.multi_reduction <maximumf>, %113, %cst_30 [1] : vector<8x8xf32> to vector<8xf32>
    %115 = vector.shape_cast %114 : vector<8xf32> to vector<8x1xf32>
    %116 = vector.broadcast %115 : vector<8x1xf32> to vector<8x8xf32>
    %117 = arith.subf %113, %116 : vector<8x8xf32>
    %118 = math.exp %117 : vector<8x8xf32>
    %cst_31 = arith.constant dense<0.000000e+00> : vector<8xf32>
    %119 = vector.multi_reduction <add>, %118, %cst_31 [1] : vector<8x8xf32> to vector<8xf32>
    %120 = vector.shape_cast %119 : vector<8xf32> to vector<8x1xf32>
    %121 = tpu.reciprocal %120 {approx = true} : vector<8x1xf32> -> vector<8x1xf32>
    %122 = vector.broadcast %121 : vector<8x1xf32> to vector<8x8xf32>
    %123 = arith.mulf %118, %122 : vector<8x8xf32>
    %124 = arith.truncf %123 : vector<8x8xf32> to vector<8x8xbf16>
    %cst_32 = arith.constant dense<0.000000e+00> : vector<8x8xf32>
    %125 = tpu.matmul %124, %110, %cst_32 {dimension_numbers = #tpu.dot_dimension_numbers<[1], [0], [0], [1], [0, 0, 1, 1], [], []>} : vector<8x8xbf16>, vector<8x8xbf16>, vector<8x8xf32> -> vector<8x8xf32>
    %126 = vector.extract_strided_slice %19 {offsets = [8, 8], sizes = [8, 8], strides = [1, 1]} : vector<16x96xf32> to vector<8x8xf32>
    %127 = arith.truncf %126 : vector<8x8xf32> to vector<8x8xbf16>
    %128 = vector.extract_strided_slice %19 {offsets = [8, 40], sizes = [8, 8], strides = [1, 1]} : vector<16x96xf32> to vector<8x8xf32>
    %129 = arith.truncf %128 : vector<8x8xf32> to vector<8x8xbf16>
    %130 = vector.extract_strided_slice %19 {offsets = [8, 72], sizes = [8, 8], strides = [1, 1]} : vector<16x96xf32> to vector<8x8xf32>
    %131 = arith.truncf %130 : vector<8x8xf32> to vector<8x8xbf16>
    "tpu.trace_start"() <{level = 10 : i32, message = "qe,ke->qk"}> : () -> ()
    %cst_33 = arith.constant dense<0.000000e+00> : vector<8x8xf32>
    %132 = tpu.matmul %127, %129, %cst_33 {dimension_numbers = #tpu.dot_dimension_numbers<[1], [1], [0], [0], [0, 0, 1, 0], [], []>} : vector<8x8xbf16>, vector<8x8xbf16>, vector<8x8xf32> -> vector<8x8xf32>
    "tpu.trace_stop"() : () -> ()
    %cst_34 = arith.constant 0.353553385 : f32
    %133 = vector.broadcast %cst_34 : f32 to vector<8x8xf32>
    %134 = arith.mulf %132, %133 : vector<8x8xf32>
    %cst_35 = arith.constant dense<0xFF800000> : vector<8xf32>
    %135 = vector.multi_reduction <maximumf>, %134, %cst_35 [1] : vector<8x8xf32> to vector<8xf32>
    %136 = vector.shape_cast %135 : vector<8xf32> to vector<8x1xf32>
    %137 = vector.broadcast %136 : vector<8x1xf32> to vector<8x8xf32>
    %138 = arith.subf %134, %137 : vector<8x8xf32>
    %139 = math.exp %138 : vector<8x8xf32>
    %cst_36 = arith.constant dense<0.000000e+00> : vector<8xf32>
    %140 = vector.multi_reduction <add>, %139, %cst_36 [1] : vector<8x8xf32> to vector<8xf32>
    %141 = vector.shape_cast %140 : vector<8xf32> to vector<8x1xf32>
    %142 = tpu.reciprocal %141 {approx = true} : vector<8x1xf32> -> vector<8x1xf32>
    %143 = vector.broadcast %142 : vector<8x1xf32> to vector<8x8xf32>
    %144 = arith.mulf %139, %143 : vector<8x8xf32>
    %145 = arith.truncf %144 : vector<8x8xf32> to vector<8x8xbf16>
    %cst_37 = arith.constant dense<0.000000e+00> : vector<8x8xf32>
    %146 = tpu.matmul %145, %131, %cst_37 {dimension_numbers = #tpu.dot_dimension_numbers<[1], [0], [0], [1], [0, 0, 1, 1], [], []>} : vector<8x8xbf16>, vector<8x8xbf16>, vector<8x8xf32> -> vector<8x8xf32>
    %147 = vector.extract_strided_slice %19 {offsets = [8, 16], sizes = [8, 8], strides = [1, 1]} : vector<16x96xf32> to vector<8x8xf32>
    %148 = arith.truncf %147 : vector<8x8xf32> to vector<8x8xbf16>
    %149 = vector.extract_strided_slice %19 {offsets = [8, 48], sizes = [8, 8], strides = [1, 1]} : vector<16x96xf32> to vector<8x8xf32>
    %150 = arith.truncf %149 : vector<8x8xf32> to vector<8x8xbf16>
    %151 = vector.extract_strided_slice %19 {offsets = [8, 80], sizes = [8, 8], strides = [1, 1]} : vector<16x96xf32> to vector<8x8xf32>
    %152 = arith.truncf %151 : vector<8x8xf32> to vector<8x8xbf16>
    "tpu.trace_start"() <{level = 10 : i32, message = "qe,ke->qk"}> : () -> ()
    %cst_38 = arith.constant dense<0.000000e+00> : vector<8x8xf32>
    %153 = tpu.matmul %148, %150, %cst_38 {dimension_numbers = #tpu.dot_dimension_numbers<[1], [1], [0], [0], [0, 0, 1, 0], [], []>} : vector<8x8xbf16>, vector<8x8xbf16>, vector<8x8xf32> -> vector<8x8xf32>
    "tpu.trace_stop"() : () -> ()
    %cst_39 = arith.constant 0.353553385 : f32
    %154 = vector.broadcast %cst_39 : f32 to vector<8x8xf32>
    %155 = arith.mulf %153, %154 : vector<8x8xf32>
    %cst_40 = arith.constant dense<0xFF800000> : vector<8xf32>
    %156 = vector.multi_reduction <maximumf>, %155, %cst_40 [1] : vector<8x8xf32> to vector<8xf32>
    %157 = vector.shape_cast %156 : vector<8xf32> to vector<8x1xf32>
    %158 = vector.broadcast %157 : vector<8x1xf32> to vector<8x8xf32>
    %159 = arith.subf %155, %158 : vector<8x8xf32>
    %160 = math.exp %159 : vector<8x8xf32>
    %cst_41 = arith.constant dense<0.000000e+00> : vector<8xf32>
    %161 = vector.multi_reduction <add>, %160, %cst_41 [1] : vector<8x8xf32> to vector<8xf32>
    %162 = vector.shape_cast %161 : vector<8xf32> to vector<8x1xf32>
    %163 = tpu.reciprocal %162 {approx = true} : vector<8x1xf32> -> vector<8x1xf32>
    %164 = vector.broadcast %163 : vector<8x1xf32> to vector<8x8xf32>
    %165 = arith.mulf %160, %164 : vector<8x8xf32>
    %166 = arith.truncf %165 : vector<8x8xf32> to vector<8x8xbf16>
    %cst_42 = arith.constant dense<0.000000e+00> : vector<8x8xf32>
    %167 = tpu.matmul %166, %152, %cst_42 {dimension_numbers = #tpu.dot_dimension_numbers<[1], [0], [0], [1], [0, 0, 1, 1], [], []>} : vector<8x8xbf16>, vector<8x8xbf16>, vector<8x8xf32> -> vector<8x8xf32>
    %168 = vector.extract_strided_slice %19 {offsets = [8, 24], sizes = [8, 8], strides = [1, 1]} : vector<16x96xf32> to vector<8x8xf32>
    %169 = arith.truncf %168 : vector<8x8xf32> to vector<8x8xbf16>
    %170 = vector.extract_strided_slice %19 {offsets = [8, 56], sizes = [8, 8], strides = [1, 1]} : vector<16x96xf32> to vector<8x8xf32>
    %171 = arith.truncf %170 : vector<8x8xf32> to vector<8x8xbf16>
    %172 = vector.extract_strided_slice %19 {offsets = [8, 88], sizes = [8, 8], strides = [1, 1]} : vector<16x96xf32> to vector<8x8xf32>
    %173 = arith.truncf %172 : vector<8x8xf32> to vector<8x8xbf16>
    "tpu.trace_start"() <{level = 10 : i32, message = "qe,ke->qk"}> : () -> ()
    %cst_43 = arith.constant dense<0.000000e+00> : vector<8x8xf32>
    %174 = tpu.matmul %169, %171, %cst_43 {dimension_numbers = #tpu.dot_dimension_numbers<[1], [1], [0], [0], [0, 0, 1, 0], [], []>} : vector<8x8xbf16>, vector<8x8xbf16>, vector<8x8xf32> -> vector<8x8xf32>
    "tpu.trace_stop"() : () -> ()
    %cst_44 = arith.constant 0.353553385 : f32
    %175 = vector.broadcast %cst_44 : f32 to vector<8x8xf32>
    %176 = arith.mulf %174, %175 : vector<8x8xf32>
    %cst_45 = arith.constant dense<0xFF800000> : vector<8xf32>
    %177 = vector.multi_reduction <maximumf>, %176, %cst_45 [1] : vector<8x8xf32> to vector<8xf32>
    %178 = vector.shape_cast %177 : vector<8xf32> to vector<8x1xf32>
    %179 = vector.broadcast %178 : vector<8x1xf32> to vector<8x8xf32>
    %180 = arith.subf %176, %179 : vector<8x8xf32>
    %181 = math.exp %180 : vector<8x8xf32>
    %cst_46 = arith.constant dense<0.000000e+00> : vector<8xf32>
    %182 = vector.multi_reduction <add>, %181, %cst_46 [1] : vector<8x8xf32> to vector<8xf32>
    %183 = vector.shape_cast %182 : vector<8xf32> to vector<8x1xf32>
    %184 = tpu.reciprocal %183 {approx = true} : vector<8x1xf32> -> vector<8x1xf32>
    %185 = vector.broadcast %184 : vector<8x1xf32> to vector<8x8xf32>
    %186 = arith.mulf %181, %185 : vector<8x8xf32>
    %187 = arith.truncf %186 : vector<8x8xf32> to vector<8x8xbf16>
    %cst_47 = arith.constant dense<0.000000e+00> : vector<8x8xf32>
    %188 = tpu.matmul %187, %173, %cst_47 {dimension_numbers = #tpu.dot_dimension_numbers<[1], [0], [0], [1], [0, 0, 1, 1], [], []>} : vector<8x8xbf16>, vector<8x8xbf16>, vector<8x8xf32> -> vector<8x8xf32>
    %189 = tpu.concatenate %125, %146, %167, %188 in 1 : vector<8x8xf32>, vector<8x8xf32>, vector<8x8xf32>, vector<8x8xf32> -> vector<8x32xf32>
    %190 = tpu.concatenate %104, %189 in 0 : vector<8x32xf32>, vector<8x32xf32> -> vector<16x32xf32>
    %191 = arith.truncf %190 : vector<16x32xf32> to vector<16x32xbf16>
    %c0_48 = arith.constant 0 : index
    %c0_49 = arith.constant 0 : index
    %c0_50 = arith.constant 0 : index
    %192 = vector.load %arg5[%c0_48, %c0_49, %c0_50] : memref<1x32x32xbf16, #tpu.memory_space<vmem>>, vector<1x32x32xbf16>
    %193 = vector.shape_cast %192 : vector<1x32x32xbf16> to vector<32x32xbf16>
    %cst_51 = arith.constant dense<0.000000e+00> : vector<16x32xf32>
    %194 = tpu.matmul %191, %193, %cst_51 {dimension_numbers = #tpu.dot_dimension_numbers<[1], [0], [0], [1], [0, 0, 1, 1], [], []>} : vector<16x32xbf16>, vector<32x32xbf16>, vector<16x32xf32> -> vector<16x32xf32>
    %195 = vector.broadcast %7 : vector<1x32xf32> to vector<16x32xf32>
    %196 = arith.addf %194, %195 : vector<16x32xf32>
    %197 = arith.addf %3, %196 : vector<16x32xf32>
    %cst_52 = arith.constant dense<0.000000e+00> : vector<16xf32>
    %198 = vector.multi_reduction <add>, %197, %cst_52 [1] : vector<16x32xf32> to vector<16xf32>
    %199 = vector.shape_cast %198 : vector<16xf32> to vector<16x1xf32>
    %cst_53 = arith.constant 3.200000e+01 : f32
    %200 = vector.broadcast %cst_53 : f32 to vector<16x1xf32>
    %201 = arith.divf %199, %200 : vector<16x1xf32>
    %202 = vector.broadcast %201 : vector<16x1xf32> to vector<16x32xf32>
    %203 = arith.subf %197, %202 : vector<16x32xf32>
    %204 = arith.mulf %203, %203 : vector<16x32xf32>
    %cst_54 = arith.constant dense<0.000000e+00> : vector<16xf32>
    %205 = vector.multi_reduction <add>, %204, %cst_54 [1] : vector<16x32xf32> to vector<16xf32>
    %206 = vector.shape_cast %205 : vector<16xf32> to vector<16x1xf32>
    %cst_55 = arith.constant 3.200000e+01 : f32
    %207 = vector.broadcast %cst_55 : f32 to vector<16x1xf32>
    %208 = arith.divf %206, %207 : vector<16x1xf32>
    %209 = vector.broadcast %201 : vector<16x1xf32> to vector<16x32xf32>
    %210 = arith.subf %197, %209 : vector<16x32xf32>
    %cst_56 = arith.constant 9.99999974E-6 : f32
    %211 = vector.broadcast %cst_56 : f32 to vector<16x1xf32>
    %212 = arith.addf %208, %211 : vector<16x1xf32>
    %213 = math.rsqrt %212 : vector<16x1xf32>
    %214 = vector.broadcast %213 : vector<16x1xf32> to vector<16x32xf32>
    %215 = arith.mulf %210, %214 : vector<16x32xf32>
    %216 = vector.broadcast %8 : vector<1x32xf32> to vector<16x32xf32>
    %217 = arith.mulf %215, %216 : vector<16x32xf32>
    %218 = vector.broadcast %9 : vector<1x32xf32> to vector<16x32xf32>
    %219 = arith.addf %217, %218 : vector<16x32xf32>
    %220 = arith.truncf %219 : vector<16x32xf32> to vector<16x32xbf16>
    %c0_57 = arith.constant 0 : index
    %c0_58 = arith.constant 0 : index
    %c0_59 = arith.constant 0 : index
    %221 = vector.load %arg6[%c0_57, %c0_58, %c0_59] : memref<1x32x64xbf16, #tpu.memory_space<vmem>>, vector<1x32x64xbf16>
    %222 = vector.shape_cast %221 : vector<1x32x64xbf16> to vector<32x64xbf16>
    %cst_60 = arith.constant dense<0.000000e+00> : vector<16x64xf32>
    %223 = tpu.matmul %220, %222, %cst_60 {dimension_numbers = #tpu.dot_dimension_numbers<[1], [0], [0], [1], [0, 0, 1, 1], [], []>} : vector<16x32xbf16>, vector<32x64xbf16>, vector<16x64xf32> -> vector<16x64xf32>
    %224 = vector.broadcast %10 : vector<1x64xf32> to vector<16x64xf32>
    %225 = arith.addf %223, %224 : vector<16x64xf32>
    %cst_61 = arith.constant 0.000000e+00 : f32
    %226 = vector.broadcast %cst_61 : f32 to vector<16x64xf32>
    %227 = arith.maximumf %225, %226 : vector<16x64xf32>
    %228 = arith.truncf %227 : vector<16x64xf32> to vector<16x64xbf16>
    %c0_62 = arith.constant 0 : index
    %c0_63 = arith.constant 0 : index
    %c0_64 = arith.constant 0 : index
    %229 = vector.load %arg7[%c0_62, %c0_63, %c0_64] : memref<1x64x32xbf16, #tpu.memory_space<vmem>>, vector<1x64x32xbf16>
    %230 = vector.shape_cast %229 : vector<1x64x32xbf16> to vector<64x32xbf16>
    %cst_65 = arith.constant dense<0.000000e+00> : vector<16x32xf32>
    %231 = tpu.matmul %228, %230, %cst_65 {dimension_numbers = #tpu.dot_dimension_numbers<[1], [0], [0], [1], [0, 0, 1, 1], [], []>} : vector<16x64xbf16>, vector<64x32xbf16>, vector<16x32xf32> -> vector<16x32xf32>
    %232 = vector.broadcast %11 : vector<1x32xf32> to vector<16x32xf32>
    %233 = arith.addf %231, %232 : vector<16x32xf32>
    %234 = arith.addf %219, %233 : vector<16x32xf32>
    %cst_66 = arith.constant dense<0.000000e+00> : vector<16xf32>
    %235 = vector.multi_reduction <add>, %234, %cst_66 [1] : vector<16x32xf32> to vector<16xf32>
    %236 = vector.shape_cast %235 : vector<16xf32> to vector<16x1xf32>
    %cst_67 = arith.constant 3.200000e+01 : f32
    %237 = vector.broadcast %cst_67 : f32 to vector<16x1xf32>
    %238 = arith.divf %236, %237 : vector<16x1xf32>
    %239 = vector.broadcast %238 : vector<16x1xf32> to vector<16x32xf32>
    %240 = arith.subf %234, %239 : vector<16x32xf32>
    %241 = arith.mulf %240, %240 : vector<16x32xf32>
    %cst_68 = arith.constant dense<0.000000e+00> : vector<16xf32>
    %242 = vector.multi_reduction <add>, %241, %cst_68 [1] : vector<16x32xf32> to vector<16xf32>
    %243 = vector.shape_cast %242 : vector<16xf32> to vector<16x1xf32>
    %cst_69 = arith.constant 3.200000e+01 : f32
    %244 = vector.broadcast %cst_69 : f32 to vector<16x1xf32>
    %245 = arith.divf %243, %244 : vector<16x1xf32>
    %246 = vector.broadcast %238 : vector<16x1xf32> to vector<16x32xf32>
    %247 = arith.subf %234, %246 : vector<16x32xf32>
    %cst_70 = arith.constant 9.99999974E-6 : f32
    %248 = vector.broadcast %cst_70 : f32 to vector<16x1xf32>
    %249 = arith.addf %245, %248 : vector<16x1xf32>
    %250 = math.rsqrt %249 : vector<16x1xf32>
    %251 = vector.broadcast %250 : vector<16x1xf32> to vector<16x32xf32>
    %252 = arith.mulf %247, %251 : vector<16x32xf32>
    %253 = vector.broadcast %12 : vector<1x32xf32> to vector<16x32xf32>
    %254 = arith.mulf %252, %253 : vector<16x32xf32>
    %255 = vector.broadcast %13 : vector<1x32xf32> to vector<16x32xf32>
    %256 = arith.addf %254, %255 : vector<16x32xf32>
    %c0_71 = arith.constant 0 : index
    %c0_72 = arith.constant 0 : index
    %257 = vector.load %arg12[%c0_71, %c0_72] : memref<16x32xf32, #tpu.memory_space<vmem>>, vector<16x32xf32>
    tpu.vector_store %arg12[%c0_71, %c0_72], %256 {strides = array<i32>} : memref<16x32xf32, #tpu.memory_space<vmem>>, vector<16x32xf32>,
    %c1_i32 = arith.constant 1 : i32
    %258 = arith.cmpi eq, %arg1, %c1_i32 : i32
    %259 = arith.extui %258 : i1 to i32
    %c0_i32_73 = arith.constant 0 : i32
    %260 = arith.cmpi ne, %259, %c0_i32_73 : i32
    scf.if %260 {
      %261 = vector.extract_strided_slice %256 {offsets = [0, 0], sizes = [8, 32], strides = [1, 1]} : vector<16x32xf32> to vector<8x32xf32>
      %cst_74 = arith.constant dense<0.000000e+00> : vector<32xf32>
      %262 = vector.multi_reduction <add>, %261, %cst_74 [0] : vector<8x32xf32> to vector<32xf32>
      %263 = vector.shape_cast %262 : vector<32xf32> to vector<1x32xf32>
      %cst_75 = arith.constant 8.000000e+00 : f32
      %264 = vector.broadcast %cst_75 : f32 to vector<1x32xf32>
      %265 = arith.divf %263, %264 : vector<1x32xf32>
      %266 = vector.extract_strided_slice %256 {offsets = [8, 0], sizes = [8, 32], strides = [1, 1]} : vector<16x32xf32> to vector<8x32xf32>
      %cst_76 = arith.constant dense<0.000000e+00> : vector<32xf32>
      %267 = vector.multi_reduction <add>, %266, %cst_76 [0] : vector<8x32xf32> to vector<32xf32>
      %268 = vector.shape_cast %267 : vector<32xf32> to vector<1x32xf32>
      %cst_77 = arith.constant 8.000000e+00 : f32
      %269 = vector.broadcast %cst_77 : f32 to vector<1x32xf32>
      %270 = arith.divf %268, %269 : vector<1x32xf32>
      %271 = tpu.concatenate %265, %270 in 0 : vector<1x32xf32>, vector<1x32xf32> -> vector<2x32xf32>
      %c0_78 = arith.constant 0 : index
      %c0_79 = arith.constant 0 : index
      %272 = vector.load %arg9[%c0_78, %c0_79] : memref<32x8xf32, #tpu.memory_space<vmem>>, vector<32x8xf32>
      %cst_80 = arith.constant dense<0.000000e+00> : vector<2x8xf32>
      %273 = tpu.matmul %271, %272, %cst_80 {dimension_numbers = #tpu.dot_dimension_numbers<[1], [0], [0], [1], [0, 0, 1, 1], [], []>} : vector<2x32xf32>, vector<32x8xf32>, vector<2x8xf32> -> vector<2x8xf32>
      %c0_81 = arith.constant 0 : index
      %c0_82 = arith.constant 0 : index
      %274 = vector.load %arg10[%c0_81, %c0_82] : memref<1x8xf32, #tpu.memory_space<vmem>>, vector<1x8xf32>
      %275 = vector.broadcast %274 : vector<1x8xf32> to vector<2x8xf32>
      %276 = arith.addf %273, %275 : vector<2x8xf32>
      %277 = vector.shape_cast %276 : vector<2x8xf32> to vector<2x1x8xf32>
      %c0_83 = arith.constant 0 : index
      %c0_84 = arith.constant 0 : index
      %c0_85 = arith.constant 0 : index
      %278 = vector.load %arg11[%c0_83, %c0_84, %c0_85] : memref<2x1x8xf32, #tpu.memory_space<vmem>>, vector<2x1x8xf32>
      tpu.vector_store %arg11[%c0_83, %c0_84, %c0_85], %277 {strides = array<i32>} : memref<2x1x8xf32, #tpu.memory_space<vmem>>, vector<2x1x8xf32>,
    } else {
    }
    return
  }
  func.func @transform_0(%arg0: i32, %arg1: i32) -> (i32, i32) {
    %c0_i32 = arith.constant 0 : i32
    %c0_i32_0 = arith.constant 0 : i32
    return %arg0, %c0_i32 : i32, i32
  }
  func.func @transform_1(%arg0: i32, %arg1: i32) -> (i32, i32) {
    %c0_i32 = arith.constant 0 : i32
    %c0_i32_0 = arith.constant 0 : i32
    %c0_i32_1 = arith.constant 0 : i32
    return %c0_i32, %c0_i32_0 : i32, i32
  }
  func.func @transform_2(%arg0: i32, %arg1: i32) -> (i32, i32, i32) {
    %c0_i32 = arith.constant 0 : i32
    %c0_i32_0 = arith.constant 0 : i32
    %c0_i32_1 = arith.constant 0 : i32
    return %arg1, %c0_i32, %c0_i32_0 : i32, i32, i32
  }
  func.func @transform_3(%arg0: i32, %arg1: i32) -> (i32, i32, i32) {
    %c0_i32 = arith.constant 0 : i32
    %c0_i32_0 = arith.constant 0 : i32
    %c0_i32_1 = arith.constant 0 : i32
    return %arg1, %c0_i32, %c0_i32_0 : i32, i32, i32
  }
  func.func @transform_4(%arg0: i32, %arg1: i32) -> (i32, i32, i32) {
    %c0_i32 = arith.constant 0 : i32
    %c0_i32_0 = arith.constant 0 : i32
    %c0_i32_1 = arith.constant 0 : i32
    return %arg1, %c0_i32, %c0_i32_0 : i32, i32, i32
  }
  func.func @transform_5(%arg0: i32, %arg1: i32) -> (i32, i32, i32) {
    %c0_i32 = arith.constant 0 : i32
    %c0_i32_0 = arith.constant 0 : i32
    %c0_i32_1 = arith.constant 0 : i32
    return %arg1, %c0_i32, %c0_i32_0 : i32, i32, i32
  }
  func.func @transform_6(%arg0: i32, %arg1: i32) -> (i32, i32, i32) {
    %c0_i32 = arith.constant 0 : i32
    %c0_i32_0 = arith.constant 0 : i32
    %c0_i32_1 = arith.constant 0 : i32
    return %arg1, %c0_i32, %c0_i32_0 : i32, i32, i32
  }
  func.func @transform_7(%arg0: i32, %arg1: i32) -> (i32, i32) {
    %c0_i32 = arith.constant 0 : i32
    %c0_i32_0 = arith.constant 0 : i32
    %c0_i32_1 = arith.constant 0 : i32
    return %c0_i32, %c0_i32_0 : i32, i32
  }
  func.func @transform_8(%arg0: i32, %arg1: i32) -> (i32, i32) {
    %c0_i32 = arith.constant 0 : i32
    %c0_i32_0 = arith.constant 0 : i32
    %c0_i32_1 = arith.constant 0 : i32
    return %c0_i32, %c0_i32_0 : i32, i32
  }
  func.func @transform_9(%arg0: i32, %arg1: i32) -> (i32, i32, i32) {
    %c0_i32 = arith.constant 0 : i32
    %c0_i32_0 = arith.constant 0 : i32
    %c0_i32_1 = arith.constant 0 : i32
    return %arg0, %c0_i32, %c0_i32_0 : i32, i32, i32
  }
}

</mosaic_0001>

<bundles_post_ra>
// kernel: encoder_net_forward.1
= control target key start
LH: loop header
LB: loop body
LE: loop exit
PB: predicated region body
PF: predicated region fallthrough
CT: control target
= control target key end

     0   :  { %14 = vsyncpa [#allocation4], 0  ;;  %s2497_s30 = smov 0   ;;  %s2499_s10 = smov 0   ;;  %s2862_s0 = inlined_call_operand.vmem [shape: f32[16,32], index: 0, kind: input, shape index: {}]   ;;  %s2863_s1 = inlined_call_operand.vmem [shape: f32[16,32], index: 1, kind: input, shape index: {}]   ;;  %s2864_s2 = inlined_call_operand.vmem [shape: bf16[2,32,96], index: 2, kind: input, shape index: {}]   ;;  %s2865_s3 = inlined_call_operand.vmem [shape: bf16[2,32,32], index: 3, kind: input, shape index: {}]   ;;  %s2866_s4 = inlined_call_operand.vmem [shape: bf16[2,32,64], index: 4, kind: input, shape index: {}]   ;;  %s2867_s5 = inlined_call_operand.vmem [shape: bf16[2,64,32], index: 5, kind: input, shape index: {}]   ;;  %s2868_s6 = inlined_call_operand.vmem [shape: f32[2,8,128], index: 6, kind: input, shape index: {}]   ;;  %s2869_s7 = inlined_call_operand.vmem [shape: f32[32,8], index: 7, kind: input, shape index: {}]   ;;  %s2870_s8 = inlined_call_operand.vmem [shape: f32[1,8], index: 8, kind: input, shape index: {}]   ;;  %s2871_s9 = inlined_call_operand.hbm [shape: f32[2,1,8], index: 9, kind: output, shape index: {}]  }
   0x1   :  { %s2501_s11 = smov 0  }
   0x2 LB: > { %s29_s13 = sadd.s32 1, %s2419_s10  ;;  %p2002_p1 = scmp.ge.s32.totalorder %s2423_s11, 1  ;;  %s2423_s11 = sphi %s2501_s11, %s20_s11   ;;  %s2419_s10 = sphi %s2499_s10, %s2877_s10   ;;  %s2415_s30 = sphi %s2497_s30, %s2876_s30  }
   0x3   : > { %p30_p0 = scmp.ge.s32.totalorder %s29_s13, 2  ;;  %p350_p2 = scmp.lt.s32.totalorder %s2423_s11, 3 }
   0x5   : > { %s2879_s13 = smov (%p30_p0, %s29_s13), 0  ;;  %p351_p3 = pnand %p2002_p1, %p350_p2 }
   0x6   : > { %2872 = sst [smem:[#allocation6_spill]] %s2879_s13  ;;  %p411_p4 = scmp.lt.s32.totalorder (!%p351_p3), %s2415_s30, 1 }
   0x7   : > { %354 = sbr.rel (%p351_p3) target bundleno = 2891 (0xb4b), region = 56  ;;  %p2012_p5 = scmp.ne.s32.totalorder (!%p351_p3), %s2415_s30, 0 }
   0xe   : > { %s412_s14 = scalar_select %p411_p4, %s2415_s30, 1 }
   0xf   : > { %440 = sbr.rel (%p2012_p5) target bundleno = 22 (0x16), region = 60  ;;  %v441_v0 = vld [vmem:[%s2862_s0] sm:$0xff] (!%p2012_p5)  ;;  %vm447_vm0 = vcmask (!%p2012_p5), 261120   ;;  %v442_v2 = vld [vmem:[%s2862_s0 + $0x8] sm:$0xff] (!%p2012_p5) }
  0x10   : > { %s2050_s15 = sshll.u32 %s412_s14, 4  ;;  %s2053_s16 = sshll.u32 %s412_s14, 5  ;;  %v443_v1 = vld [vmem:[%s2863_s1] sm:$0xff] (!%p2012_p5)  ;;  %v444_v4 = vld [vmem:[%s2863_s1 + $0x8] sm:$0xff] (!%p2012_p5) }
  0x11   : > { %s415_s19 = scalar_lea.vmem %s2864_s2, %s2050_s15  ;;  %s2526_s22 = scalar_lea.vmem %s2865_s3, %s2050_s15  ;;  %v445_v3 = vadd.f32 (!%p2012_p5), %v443_v1, %v441_v0  ;;  %v446_v5 = vadd.f32 (!%p2012_p5), %v444_v4, %v442_v2 }
  0x12   : > { %s2531_s25 = scalar_lea.vmem %s2866_s4, %s2050_s15  ;;  %s2536_s28 = scalar_lea.vmem %s2867_s5, %s2053_s16 }
  0x13   : > { %s2011_s29 = sshll.u32 %s412_s14, 3  ;;  %448 = vst.msk [vmem:[#allocation2] sm:$0xff] (!%p2012_p5), %vm447_vm0, %v445_v3  ;;  %449 = vst.msk [vmem:[#allocation2 + $0x8] sm:$0xff] (!%p2012_p5), %vm447_vm0, %v446_v5 }
  0x14   : > { %s2541_s17 = scalar_lea.vmem %s2868_s6, %s2011_s29 }
  0x16 PF: > { %v2321_v6 = vld [vmem:[%s415_s19] sm:$0xff]   ;;  %v2425_v7 = vmov 0.0   ;;  %v2322_v8 = vld [vmem:[%s415_s19 + $0x8] sm:$0xff]   ;;  %vm2426_vm1 = vmmov 0   ;;  %vm474_vm2 = vcmask 261120   ;;  %v458_v12 = vlaneseq  ;;  %s2427_s14 = smov 120  }
  0x17   : > { %2105 = vmatprep.subr.bf16.mxu0 %v2425_v7  ;;  %2113 = vmatprep.subr.bf16.mxu1 %v2425_v7  ;;  %v2577_v15 = vld [vmem:[%s2541_s17] sm:$0xff]  ;;  %s2428_s19 = smov 96   ;;  %s2429_s24 = smov 80   ;;  %vm523_vm3 = vcmask 64512   ;;  %vm588_vm4 = vcmask 1043456   ;;  %vm978_vm5 = vcmask 130048  }
  0x18   : > { %2106 = vmatpush3.bf16.msra.mxu0 %v2321_v6  ;;  %2109 = vmatprep.mubr.msk.bf16.mxu0 %vm2426_vm1, %v2425_v7  ;;  %v2573_v13 = vshrl.u32 %v458_v12, 7  ;;  %s2430_s26 = smov 88   ;;  %s2431_s27 = smov 72   ;;  %vm980_vm6 = vcmask 195584   ;;  %vm1651_vm7 = vcmask 523264  }
  0x19   : > { %2107 = vmatprep.subr.bf16.mxu0 %v2425_v7  ;;  %2115 = vmatprep.mubr.msk.bf16.mxu1 %vm2426_vm1, %v2425_v7  ;;  %s2432_s29 = smov 112   ;;  %s2433_s17 = smov 104  }
  0x1a   : > { %v2560_v9 = vld [vmem:[#allocation2] sm:$0xff]  ;;  %v2562_v10 = vld [vmem:[#allocation2 + $0x8] sm:$0xff]  ;;  %v460_v14 = vsub.s32 0, %v2573_v13  ;;  %s2434_s18 = smov 56   ;;  %s2435_s20 = smov 64  }
  0x1b   : > { %v453_v11 = vpack.c.bf16 %v2562_v10, %v2560_v9  ;;  %s2436_s15 = smov 48   ;;  %s2437_s21 = smov 40  }
  0x1c   : > { %2108 = vmatpush3.bf16.msra.mxu0 %v2322_v8  ;;  %v461_v16 = vrot.slane %v2577_v15, %v460_v14  ;;  %s2438_s16 = smov 8   ;;  %s2439_s23 = smov 16  }
  0x1d   : > { %2119 = vmatprep.subr.bf16.mxu0 %v2425_v7  ;;  %s2440_s12 = smov 24   ;;  %p2043_p6 = scmp.ne.s32.totalorder %s2415_s30, 1 }
  0x1e   : > { %vm2442_vm8 = vmmov (!%p2043_p6), 0   ;;  %vm1759_vm9 = vcmask (!%p2043_p6), 1040384   ;;  %vm1870_vm10 = vcmask (!%p2043_p6), 57344  }
  0x1f   : > { %2110 = vmatmul.mubr.msk.bf16.vlgmr.msra.gmra.mrb[0].mxu0 %vm474_vm2, %v453_v11 }
  0x20   : > { %2121 = vmatprep.mubr.msk.bf16.mxu0 %vm2426_vm1, %v2425_v7 }
  0xf2   : > { %v512_v17 = vpop.f32.mrb[0].mxu0 }
  0xf3   : > { %v513_v18 = vadd.f32 %v512_v17, %v461_v16  ;;  %v2111_v19 = vpop.f32.mrb[1].mxu0 }
  0xf4   : > { %v515_v20 = vpop.f32.mrb[2].mxu0 }
  0xf5   : > { %v2580_v21 = vpack.c.bf16 %v513_v18, %v513_v18  ;;  %v2112_v22 = vpop.f32.mrb[3].mxu0  ;;  %v516_v23 = vadd.f32 %v515_v20, %v461_v16 }
  0xf7   : > { %632 = vrot.lane.b32.xlu1 %v2580_v21, %s2427_s14  ;;  %521 = vrot.lane.b32.xlu0 %v2580_v21, %s2428_s19  ;;  %v2588_v24 = vpack.c.bf16 %v516_v23, %v516_v23 }
  0xfb   : > { %745 = vrot.lane.b32.xlu1 %v2580_v21, %s2429_s24  ;;  %634 = vrot.lane.b32.xlu0 %v2580_v21, %s2430_s26 }
  0xff   : > { %856 = vrot.lane.b32.xlu1 %v2580_v21, %s2431_s27  ;;  %743 = vrot.lane.b32.xlu0 %v2580_v21, %s2432_s29 }
 0x103   : > { %854 = vrot.lane.b32.xlu0 %v2580_v21, %s2433_s17  ;;  %984 = vrot.lane.b32.xlu1 %v2588_v24, %s2428_s19 }
 0x107   : > { %1095 = vrot.lane.b32.xlu0 %v2588_v24, %s2430_s26  ;;  %1093 = vrot.lane.b32.xlu1 %v2588_v24, %s2427_s14 }
 0x10b   : > { %1206 = vrot.lane.b32.xlu0 %v2588_v24, %s2429_s24  ;;  %1204 = vrot.lane.b32.xlu1 %v2588_v24, %s2432_s29 }
 0x10f   : > { %1317 = vrot.lane.b32.xlu0 %v2588_v24, %s2431_s27  ;;  %1315 = vrot.lane.b32.xlu1 %v2588_v24, %s2433_s17 }
 0x169   : > { %v522_v25 = vpop.permute.xlu0 %521  ;;  %v633_v28 = vpop.permute.xlu1 %632 }
 0x16a   : > { %v528_v26 = vsel %vm523_vm3, %v522_v25, 0 }
 0x16b   : > { %2114 = vmatpush3.bf16.xpose.msra.mxu1 %v528_v26 }
 0x16c   : > { %2125 = vmatprep.subr.bf16.mxu1 %v2425_v7 }
 0x16d   : > { %v635_v27 = vpop.permute.xlu0 %634  ;;  %v746_v30 = vpop.permute.xlu1 %745 }
 0x16e   : > { %v640_v29 = vsel %vm523_vm3, %v635_v27, 0  ;;  %v751_v31 = vsel %vm523_vm3, %v746_v30, 0 }
 0x171   : > { %v857_v32 = vpop.permute.xlu1 %856  ;;  %v744_v33 = vpop.permute.xlu0 %743 }
 0x172   : > { %2116 = vmatmul.mubr.msk.bf16.vlgmr.msra.gmra.mrb[0].mxu1 %vm523_vm3, %v2580_v21  ;;  %v862_v34 = vsel %vm523_vm3, %v857_v32, 0 }
 0x173   : > { %2126 = vmatpush3.bf16.xpose.msra.mxu1 %v640_v29  ;;  %2127 = vmatprep.mubr.msk.bf16.mxu1 %vm2426_vm1, %v2425_v7 }
 0x174   : > { %2137 = vmatprep.subr.bf16.mxu1 %v2425_v7 }
 0x175   : > { %v985_v35 = vpop.permute.xlu1 %984  ;;  %v855_v36 = vpop.permute.xlu0 %854 }
 0x176   : > { %v990_v37 = vsel %vm523_vm3, %v985_v35, 0 }
 0x179   : > { %v1096_v38 = vpop.permute.xlu0 %1095  ;;  %v1094_v41 = vpop.permute.xlu1 %1093 }
 0x17a   : > { %2128 = vmatmul.mubr.msk.bf16.vlgmr.msra.gmra.mrb[4].mxu1 %vm523_vm3, %v633_v28  ;;  %v1101_v39 = vsel %vm523_vm3, %v1096_v38, 0 }
 0x17b   : > { %2138 = vmatpush3.bf16.xpose.msra.mxu1 %v751_v31  ;;  %2139 = vmatprep.mubr.msk.bf16.mxu1 %vm2426_vm1, %v2425_v7 }
 0x17c   : > { %2149 = vmatprep.subr.bf16.mxu1 %v2425_v7 }
 0x17d   : > { %v1207_v40 = vpop.permute.xlu0 %1206  ;;  %v1205_v44 = vpop.permute.xlu1 %1204 }
 0x17e   : > { %v1212_v42 = vsel %vm523_vm3, %v1207_v40, 0 }
 0x181   : > { %v1318_v43 = vpop.permute.xlu0 %1317  ;;  %v1316_v46 = vpop.permute.xlu1 %1315 }
 0x182   : > { %2140 = vmatmul.mubr.msk.bf16.vlgmr.msra.gmra.mrb[8].mxu1 %vm523_vm3, %v744_v33  ;;  %v1323_v45 = vsel %vm523_vm3, %v1318_v43, 0 }
 0x183   : > { %2150 = vmatpush3.bf16.xpose.msra.mxu1 %v862_v34  ;;  %2151 = vmatprep.mubr.msk.bf16.mxu1 %vm2426_vm1, %v2425_v7 }
 0x184   : > { %2161 = vmatprep.subr.bf16.mxu1 %v2425_v7 }
 0x18a   : > { %2152 = vmatmul.mubr.msk.bf16.vlgmr.msra.gmra.mrb[12].mxu1 %vm523_vm3, %v855_v36 }
 0x18b   : > { %2162 = vmatpush3.bf16.xpose.msra.mxu1 %v990_v37  ;;  %2163 = vmatprep.mubr.msk.bf16.mxu1 %vm2426_vm1, %v2425_v7 }
 0x18c   : > { %2173 = vmatprep.subr.bf16.mxu1 %v2425_v7 }
 0x192   : > { %2164 = vmatmul.mubr.msk.bf16.vlgmr.msra.gmra.mrb[16].mxu1 %vm523_vm3, %v2588_v24 }
 0x193   : > { %2174 = vmatpush3.bf16.xpose.msra.mxu1 %v1101_v39  ;;  %2175 = vmatprep.mubr.msk.bf16.mxu1 %vm2426_vm1, %v2425_v7 }
 0x194   : > { %2185 = vmatprep.subr.bf16.mxu1 %v2425_v7 }
 0x19a   : > { %2176 = vmatmul.mubr.msk.bf16.vlgmr.msra.gmra.mrb[20].mxu1 %vm523_vm3, %v1094_v41 }
 0x19b   : > { %2186 = vmatpush3.bf16.xpose.msra.mxu1 %v1212_v42  ;;  %2187 = vmatprep.mubr.msk.bf16.mxu1 %vm2426_vm1, %v2425_v7 }
 0x19c   : > { %2197 = vmatprep.subr.bf16.mxu1 %v2425_v7 }
 0x1a2   : > { %2188 = vmatmul.mubr.msk.bf16.vlgmr.msra.gmra.mrb[24].mxu1 %vm523_vm3, %v1205_v44 }
 0x1a3   : > { %2198 = vmatpush3.bf16.xpose.msra.mxu1 %v1323_v45  ;;  %2199 = vmatprep.mubr.msk.bf16.mxu1 %vm2426_vm1, %v2425_v7 }
 0x1a4   : > { %2209 = vmatprep.subr.bf16.mxu1 %v2425_v7 }
 0x1aa   : > { %2200 = vmatmul.mubr.msk.bf16.vlgmr.msra.gmra.mrb[28].mxu1 %vm523_vm3, %v1316_v46 }
 0x1ab   : > { %2213 = vmatprep.mubr.msk.bf16.mxu1 %vm2426_vm1, %v2425_v7 }
 0x245   : > { %v564_v47 = vpop.f32.mrb[0].mxu1 }
 0x246   : > { %v570_v48 = vmul.f32 0.35355338, %v564_v47  ;;  %v2117_v49 = vpop.f32.mrb[1].mxu1 }
 0x247   : > { %v567_v50 = vpop.f32.mrb[2].mxu1 }
 0x248   : > { %v2118_v51 = vpop.f32.mrb[3].mxu1  ;;  %v571_v52 = vsel %vm523_vm3, %v570_v48, -inf }
 0x249   : > { %572 = vmax.xlane.f32.xlu0 %v571_v52 }
 0x24d   : > { %v676_v53 = vpop.f32.mrb[4].mxu1 }
 0x24e   : > { %v682_v54 = vmul.f32 0.35355338, %v676_v53  ;;  %v2129_v55 = vpop.f32.mrb[5].mxu1 }
 0x24f   : > { %v679_v56 = vpop.f32.mrb[6].mxu1 }
 0x250   : > { %v2130_v57 = vpop.f32.mrb[7].mxu1  ;;  %v683_v58 = vsel %vm523_vm3, %v682_v54, -inf }
 0x251   : > { %684 = vmax.xlane.f32.xlu1 %v683_v58 }
 0x255   : > { %v787_v59 = vpop.f32.mrb[8].mxu1 }
 0x256   : > { %v793_v60 = vmul.f32 0.35355338, %v787_v59  ;;  %v2141_v61 = vpop.f32.mrb[9].mxu1 }
 0x257   : > { %v790_v62 = vpop.f32.mrb[10].mxu1 }
 0x258   : > { %v2142_v63 = vpop.f32.mrb[11].mxu1  ;;  %v794_v0 = vsel %vm523_vm3, %v793_v60, -inf }
 0x259   : > { %795 = vmax.xlane.f32.xlu0 %v794_v0 }
 0x25d   : > { %v898_v1 = vpop.f32.mrb[12].mxu1 }
 0x25e   : > { %v2643_v2 = vmul.f32 0.35355338, %v898_v1  ;;  %v2153_v3 = vpop.f32.mrb[13].mxu1 }
 0x25f   : > { %v901_v4 = vpop.f32.mrb[14].mxu1 }
 0x260   : > { %v2154_v5 = vpop.f32.mrb[15].mxu1  ;;  %v905_v6 = vsel %vm523_vm3, %v2643_v2, -inf }
 0x261   : > { %906 = vmax.xlane.f32.xlu0 %v905_v6 }
 0x265   : > { %v1026_v8 = vpop.f32.mrb[16].mxu1 }
 0x266   : > { %v2647_v11 = vmul.f32 0.35355338, %v1026_v8  ;;  %v2165_v12 = vpop.f32.mrb[17].mxu1 }
 0x267   : > { %v1029_v14 = vpop.f32.mrb[18].mxu1 }
 0x268   : > { %v2166_v16 = vpop.f32.mrb[19].mxu1  ;;  %v1033_v17 = vsel %vm523_vm3, %v2647_v11, -inf }
 0x269   : > { %1034 = vmax.xlane.f32.xlu1 %v1033_v17 }
 0x26d   : > { %v1137_v18 = vpop.f32.mrb[20].mxu1 }
 0x26e   : > { %v2651_v19 = vmul.f32 0.35355338, %v1137_v18  ;;  %v2177_v20 = vpop.f32.mrb[21].mxu1 }
 0x26f   : > { %v1140_v22 = vpop.f32.mrb[22].mxu1 }
 0x270   : > { %v2178_v23 = vpop.f32.mrb[23].mxu1  ;;  %v1144_v25 = vsel %vm523_vm3, %v2651_v19, -inf }
 0x271   : > { %1145 = vmax.xlane.f32.xlu0 %v1144_v25 }
 0x275   : > { %v1248_v26 = vpop.f32.mrb[24].mxu1 }
 0x276   : > { %v1254_v27 = vmul.f32 0.35355338, %v1248_v26  ;;  %v2189_v28 = vpop.f32.mrb[25].mxu1 }
 0x277   : > { %v1251_v29 = vpop.f32.mrb[26].mxu1 }
 0x278   : > { %v2190_v30 = vpop.f32.mrb[27].mxu1  ;;  %v1255_v31 = vsel %vm523_vm3, %v1254_v27, -inf }
 0x279   : > { %1256 = vmax.xlane.f32.xlu1 %v1255_v31 }
 0x27d   : > { %v1359_v32 = vpop.f32.mrb[28].mxu1 }
 0x27e   : > { %v2201_v33 = vpop.f32.mrb[29].mxu1  ;;  %v2660_v36 = vmul.f32 0.35355338, %v1359_v32 }
 0x27f   : > { %v1362_v34 = vpop.f32.mrb[30].mxu1 }
 0x280   : > { %v2202_v35 = vpop.f32.mrb[31].mxu1  ;;  %v1366_v37 = vsel %vm523_vm3, %v2660_v36, -inf }
 0x287   : > { %695 = vrot.lane.b32.xlu0 %v2580_v21, %s2434_s18 }
 0x28a   : > { %583 = vrot.lane.b32.xlu1 %v2580_v21, %s2435_s20 }
 0x2a6   : > { %1367 = vmax.xlane.f32.xlu0 %v1366_v37 }
 0x2d6   : > { %v573_v38 = vpop.xlane.xlu0 %572 }
 0x2d7   : > { %v574_v39 = vsub.f32 %v570_v48, %v573_v38 }
 0x2d9   : > { %v575_v40 = vmul.f32 1.442695, %v574_v39 }
 0x2db   : > { %2331 = vpow2.f32 %v575_v40 }
 0x2de   : > { %v685_v41 = vpop.xlane.xlu1 %684 }
 0x2df   : > { %v686_v42 = vsub.f32 %v682_v54, %v685_v41 }
 0x2e1   : > { %v687_v43 = vmul.f32 1.442695, %v686_v42 }
 0x2e3   : > { %2333 = vpow2.f32 %v687_v43 }
 0x2e5   : > { %v2664_v44 = vpop.eup %2331 }
 0x2e6   : > { %v796_v45 = vpop.xlane.xlu0 %795  ;;  %v577_v46 = vsel %vm523_vm3, %v2664_v44, 0.0 }
 0x2e7   : > { %v797_v47 = vsub.f32 %v793_v60, %v796_v45  ;;  %578 = vadd.xlane.f32.xlu1 %v577_v46 }
 0x2e9   : > { %v798_v49 = vmul.f32 1.442695, %v797_v47 }
 0x2eb   : > { %2335 = vpow2.f32 %v798_v49 }
 0x2ed   : > { %v2668_v50 = vpop.eup %2333 }
 0x2ee   : > { %v689_v48 = vsel %vm523_vm3, %v2668_v50, 0.0  ;;  %v907_v56 = vpop.xlane.xlu0 %906 }
 0x2ef   : > { %690 = vadd.xlane.f32.xlu0 %v689_v48  ;;  %v908_v58 = vsub.f32 %v2643_v2, %v907_v56 }
 0x2f1   : > { %v909_v59 = vmul.f32 1.442695, %v908_v58 }
 0x2f3   : > { %2337 = vpow2.f32 %v909_v59 }
 0x2f5   : > { %v2672_v51 = vpop.eup %2335 }
 0x2f6   : > { %v800_v52 = vsel %vm523_vm3, %v2672_v51, 0.0  ;;  %v1035_v53 = vpop.xlane.xlu1 %1034 }
 0x2f7   : > { %801 = vadd.xlane.f32.xlu1 %v800_v52  ;;  %v1036_v60 = vsub.f32 %v2647_v11, %v1035_v53 }
 0x2f9   : > { %v1037_v63 = vmul.f32 1.442695, %v1036_v60 }
 0x2fb   : > { %2339 = vpow2.f32 %v1037_v63 }
 0x2fd   : > { %v2338_v3 = vpop.eup %2337 }
 0x2fe   : > { %v1146_v61 = vpop.xlane.xlu0 %1145  ;;  %v911_v4 = vsel %vm523_vm3, %v2338_v3, 0.0 }
 0x2ff   : > { %v1147_v62 = vsub.f32 %v2651_v19, %v1146_v61 }
 0x302   : > { %v696_v14 = vpop.permute.xlu0 %695 }
 0x303   : > { %v701_v28 = vsel %vm588_vm4, %v696_v14, 0 }
 0x305   : > { %806 = vrot.lane.b32.xlu0 %v2580_v21, %s2436_s15  ;;  %v2686_v5 = vpop.eup %2339 }
 0x306   : > { %v1257_v54 = vpop.xlane.xlu1 %1256  ;;  %v1039_v6 = vsel %vm523_vm3, %v2686_v5, 0.0 }
 0x307   : > { %v1258_v0 = vsub.f32 %v1254_v27, %v1257_v54 }
 0x308   : > { %917 = vrot.lane.b32.xlu1 %v2580_v21, %s2437_s21  ;;  %v1148_v21 = vmul.f32 1.442695, %v1147_v62 }
 0x309   : > { %v1259_v1 = vmul.f32 1.442695, %v1258_v0 }
 0x30a   : > { %v584_v55 = vpop.permute.xlu1 %583  ;;  %2341 = vpow2.f32 %v1148_v21 }
 0x30b   : > { %v590_v57 = vsel %vm588_vm4, %v584_v55, 0  ;;  %2343 = vpow2.f32 %v1259_v1 }
 0x30c   : > { %2120 = vmatpush3.bf16.msra.mxu0 %v590_v57 }
 0x30d   : > { %2131 = vmatprep.subr.bf16.mxu0 %v2425_v7 }
 0x314   : > { %v2688_v2 = vpop.eup %2341 }
 0x315   : > { %v2692_v8 = vpop.eup %2343  ;;  %v1150_v11 = vsel %vm523_vm3, %v2688_v2, 0.0 }
 0x316   : > { %v1261_v12 = vsel %vm523_vm3, %v2692_v8, 0.0 }
 0x324   : > { %912 = vadd.xlane.f32.xlu0 %v911_v4 }
 0x328   : > { %1040 = vadd.xlane.f32.xlu0 %v1039_v6 }
 0x32c   : > { %1151 = vadd.xlane.f32.xlu1 %v1150_v11  ;;  %1262 = vadd.xlane.f32.xlu0 %v1261_v12 }
 0x333   : > { %v1368_v16 = vpop.xlane.xlu0 %1367 }
 0x334   : > { %v1369_v17 = vsub.f32 %v2660_v36, %v1368_v16 }
 0x336   : > { %v1370_v18 = vmul.f32 1.442695, %v1369_v17 }
 0x338   : > { %2345 = vpow2.f32 %v1370_v18 }
 0x33d   : > { %1156 = vrot.lane.b32.xlu1 %v2588_v24, %s2434_s18 }
 0x341   : > { %1267 = vrot.lane.b32.xlu1 %v2588_v24, %s2436_s15 }
 0x342   : > { %v2703_v19 = vpop.eup %2345 }
 0x343   : > { %v1372_v20 = vsel %vm523_vm3, %v2703_v19, 0.0 }
 0x344   : > { %1373 = vadd.xlane.f32.xlu0 %v1372_v20 }
 0x345   : > { %1378 = vrot.lane.b32.xlu1 %v2588_v24, %s2437_s21 }
 0x35a   : > { %1045 = vrot.lane.b32.xlu0 %v2588_v24, %s2435_s20 }
 0x374   : > { %v579_v22 = vpop.xlane.xlu1 %578 }
 0x375   : > { %2347 = vrcp.f32 %v579_v22 }
 0x37c   : > { %v691_v23 = vpop.xlane.xlu0 %690 }
 0x37d   : > { %2349 = vrcp.f32 %v691_v23 }
 0x37f   : > { %v2348_v25 = vpop.eup %2347 }
 0x380   : > { %v581_v26 = vmul.f32 %v2348_v25, %v2664_v44  ;;  %v807_v31 = vpop.permute.xlu0 %806 }
 0x381   : > { %v812_v33 = vsel %vm588_vm4, %v807_v31, 0 }
 0x382   : > { %v582_v27 = vpack.c.bf16 %v581_v26, %v581_v26 }
 0x384   : > { %2122 = vmatmul.mubr.msk.bf16.vlgmr.msra.gmra.mrb[4].mxu0 %vm523_vm3, %v582_v27  ;;  %v802_v29 = vpop.xlane.xlu1 %801 }
 0x385   : > { %2132 = vmatpush3.bf16.msra.mxu0 %v701_v28  ;;  %2351 = vrcp.f32 %v802_v29  ;;  %2133 = vmatprep.mubr.msk.bf16.mxu0 %vm2426_vm1, %v2425_v7 }
 0x386   : > { %2143 = vmatprep.subr.bf16.mxu0 %v2425_v7 }
 0x387   : > { %v2350_v24 = vpop.eup %2349 }
 0x388   : > { %v693_v30 = vmul.f32 %v2350_v24, %v2668_v50  ;;  %v918_v36 = vpop.permute.xlu1 %917  ;;  %v2323_v24 = vld [vmem:[%s2526_s22] sm:$0xff]  }
 0x389   : > { %v923_v38 = vsel %vm588_vm4, %v918_v36, 0  ;;  %2210 = vmatpush3.bf16.msra.mxu1 %v2323_v24 }
 0x38a   : > { %v694_v32 = vpack.c.bf16 %v693_v30, %v693_v30  ;;  %2211 = vmatprep.subr.bf16.mxu1 %v2425_v7 }
 0x38c   : > { %2134 = vmatmul.mubr.msk.bf16.vlgmr.msra.gmra.mrb[8].mxu0 %vm523_vm3, %v694_v32 }
 0x38d   : > { %2144 = vmatpush3.bf16.msra.mxu0 %v812_v33  ;;  %2145 = vmatprep.mubr.msk.bf16.mxu0 %vm2426_vm1, %v2425_v7 }
 0x38e   : > { %2155 = vmatprep.subr.bf16.mxu0 %v2425_v7 }
 0x38f   : > { %v2352_v34 = vpop.eup %2351 }
 0x390   : > { %v804_v35 = vmul.f32 %v2352_v34, %v2672_v51  ;;  %v2324_v34 = vld [vmem:[%s2526_s22 + $0x8] sm:$0xff]  }
 0x391   : > { %2212 = vmatpush3.bf16.msra.mxu1 %v2324_v34  ;;  %v1543_v34 = vsub.s32 3, %v2573_v13 }
 0x392   : > { %v805_v37 = vpack.c.bf16 %v804_v35, %v804_v35  ;;  %2225 = vmatprep.subr.bf16.mxu1 %v2425_v7 }
 0x394   : > { %2146 = vmatmul.mubr.msk.bf16.vlgmr.msra.gmra.mrb[12].mxu0 %vm523_vm3, %v805_v37 }
 0x395   : > { %2156 = vmatpush3.bf16.msra.mxu0 %v923_v38  ;;  %2157 = vmatprep.mubr.msk.bf16.mxu0 %vm2426_vm1, %v2425_v7 }
 0x396   : > { %2167 = vmatprep.subr.bf16.mxu0 %v2425_v7 }
 0x3b1   : > { %v913_v39 = vpop.xlane.xlu0 %912 }
 0x3b2   : > { %2353 = vrcp.f32 %v913_v39 }
 0x3b5   : > { %v1041_v43 = vpop.xlane.xlu0 %1040 }
 0x3b6   : > { %2355 = vrcp.f32 %v1041_v43 }
 0x3b9   : > { %v1152_v44 = vpop.xlane.xlu1 %1151  ;;  %v1263_v45 = vpop.xlane.xlu0 %1262 }
 0x3ba   : > { %2357 = vrcp.f32 %v1152_v44 }
 0x3bb   : > { %2359 = vrcp.f32 %v1263_v45 }
 0x3bc   : > { %v2354_v40 = vpop.eup %2353 }
 0x3bd   : > { %v915_v41 = vmul.f32 %v2354_v40, %v2338_v3  ;;  %v1157_v51 = vpop.permute.xlu1 %1156 }
 0x3be   : > { %v1162_v54 = vsel %vm588_vm4, %v1157_v51, 0 }
 0x3bf   : > { %v916_v42 = vpack.c.bf16 %v915_v41, %v915_v41 }
 0x3c0   : > { %v2356_v46 = vpop.eup %2355 }
 0x3c1   : > { %2158 = vmatmul.mubr.msk.bf16.vlgmr.msra.gmra.mrb[16].mxu0 %vm523_vm3, %v916_v42  ;;  %v1043_v49 = vmul.f32 %v2356_v46, %v2686_v5  ;;  %v1268_v56 = vpop.permute.xlu1 %1267 }
 0x3c2   : > { %2169 = vmatprep.mubr.msk.bf16.mxu0 %vm2426_vm1, %v2425_v7  ;;  %v1273_v59 = vsel %vm588_vm4, %v1268_v56, 0 }
 0x3c3   : > { %v1044_v52 = vpack.c.bf16 %v1043_v49, %v1043_v49 }
 0x3c4   : > { %v2358_v53 = vpop.eup %2357 }
 0x3c5   : > { %v1154_v55 = vmul.f32 %v2358_v53, %v2688_v2  ;;  %v2360_v58 = vpop.eup %2359  ;;  %v1379_v61 = vpop.permute.xlu1 %1378 }
 0x3c6   : > { %v1265_v60 = vmul.f32 %v2360_v58, %v2692_v8  ;;  %v1384_v0 = vsel %vm588_vm4, %v1379_v61, 0  ;;  %v1448_v61 = vsub.s32 1, %v2573_v13 }
 0x3c7   : > { %v1155_v57 = vpack.c.bf16 %v1154_v55, %v1154_v55 }
 0x3c8   : > { %v1266_v62 = vpack.c.bf16 %v1265_v60, %v1265_v60 }
 0x3d1   : > { %v1374_v47 = vpop.xlane.xlu0 %1373 }
 0x3d2   : > { %2361 = vrcp.f32 %v1374_v47 }
 0x3d5   : > { %v1046_v50 = vpop.permute.xlu0 %1045 }
 0x3d6   : > { %v1051_v48 = vsel %vm588_vm4, %v1046_v50, 0 }
 0x3d7   : > { %2168 = vmatpush3.bf16.msra.mxu0 %v1051_v48 }
 0x3d8   : > { %2179 = vmatprep.subr.bf16.mxu0 %v2425_v7 }
 0x3da   : > { %2170 = vmatmul.mubr.msk.bf16.vlgmr.msra.gmra.mrb[20].mxu0 %vm523_vm3, %v1044_v52 }
 0x3db   : > { %2180 = vmatpush3.bf16.msra.mxu0 %v1162_v54  ;;  %2181 = vmatprep.mubr.msk.bf16.mxu0 %vm2426_vm1, %v2425_v7 }
 0x3dc   : > { %2191 = vmatprep.subr.bf16.mxu0 %v2425_v7  ;;  %v2362_v63 = vpop.eup %2361 }
 0x3dd   : > { %v1376_v21 = vmul.f32 %v2362_v63, %v2703_v19 }
 0x3df   : > { %v1377_v1 = vpack.c.bf16 %v1376_v21, %v1376_v21 }
 0x3e2   : > { %2182 = vmatmul.mubr.msk.bf16.vlgmr.msra.gmra.mrb[24].mxu0 %vm523_vm3, %v1155_v57 }
 0x3e3   : > { %2192 = vmatpush3.bf16.msra.mxu0 %v1273_v59  ;;  %2193 = vmatprep.mubr.msk.bf16.mxu0 %vm2426_vm1, %v2425_v7 }
 0x3e4   : > { %2203 = vmatprep.subr.bf16.mxu0 %v2425_v7 }
 0x3ea   : > { %2194 = vmatmul.mubr.msk.bf16.vlgmr.msra.gmra.mrb[28].mxu0 %vm523_vm3, %v1266_v62  ;;  %v1449_v62 = vrot.slane %v2577_v15, %v1448_v61 }
 0x3eb   : > { %2204 = vmatpush3.bf16.msra.mxu0 %v1384_v0  ;;  %2205 = vmatprep.mubr.msk.bf16.mxu0 %vm2426_vm1, %v2425_v7 }
 0x3ec   : > { %2217 = vmatprep.subr.bf16.mxu0 %v2425_v7 }
 0x3f2   : > { %2206 = vmatmul.mubr.msk.bf16.vlgmr.msra.gmra.mrb[32].mxu0 %vm523_vm3, %v1377_v1 }
 0x3f3   : > { %2221 = vmatprep.mubr.msk.bf16.mxu0 %vm2426_vm1, %v2425_v7 }
 0x457   : > { %v626_v3 = vpop.f32.mrb[4].mxu0 }
 0x458   : > { %v2123_v4 = vpop.f32.mrb[5].mxu0 }
 0x459   : > { %v629_v5 = vpop.f32.mrb[6].mxu0 }
 0x45a   : > { %v2124_v2 = vpop.f32.mrb[7].mxu0 }
 0x45f   : > { %v737_v6 = vpop.f32.mrb[8].mxu0 }
 0x460   : > { %v2135_v8 = vpop.f32.mrb[9].mxu0 }
 0x461   : > { %v740_v11 = vpop.f32.mrb[10].mxu0 }
 0x462   : > { %v2136_v12 = vpop.f32.mrb[11].mxu0 }
 0x467   : > { %v848_v14 = vpop.f32.mrb[12].mxu0 }
 0x468   : > { %v2147_v16 = vpop.f32.mrb[13].mxu0 }
 0x469   : > { %v851_v17 = vpop.f32.mrb[14].mxu0 }
 0x46a   : > { %v2148_v18 = vpop.f32.mrb[15].mxu0 }
 0x494   : > { %v959_v19 = vpop.f32.mrb[16].mxu0 }
 0x495   : > { %v2159_v20 = vpop.f32.mrb[17].mxu0 }
 0x496   : > { %v962_v22 = vpop.f32.mrb[18].mxu0 }
 0x497   : > { %v2160_v23 = vpop.f32.mrb[19].mxu0  ;;  %v2325_v22 = vld [vmem:[%s2531_s25] sm:$0xff]  }
 0x498   : > { %2218 = vmatpush3.bf16.msra.mxu0 %v2325_v22  ;;  %v2326_v23 = vld [vmem:[%s2531_s25 + $0x8] sm:$0xff]  }
 0x499   : > { %2219 = vmatprep.subr.bf16.mxu0 %v2425_v7 }
 0x49c   : > { %2220 = vmatpush3.bf16.msra.mxu0 %v2326_v23 }
 0x4ad   : > { %v1087_v25 = vpop.f32.mrb[20].mxu0 }
 0x4ae   : > { %v2171_v26 = vpop.f32.mrb[21].mxu0 }
 0x4af   : > { %v1090_v27 = vpop.f32.mrb[22].mxu0  ;;  %v2328_v26 = vld [vmem:[%s2536_s28 + $0x8] sm:$0xff]  }
 0x4b0   : > { %v2172_v28 = vpop.f32.mrb[23].mxu0 }
 0x4b5   : > { %v1198_v29 = vpop.f32.mrb[24].mxu0 }
 0x4b6   : > { %v2306_v30 = vpack.i.bf16 %v1198_v29, %v737_v6  ;;  %v2183_v31 = vpop.f32.mrb[25].mxu0 }
 0x4b7   : > { %v1201_v32 = vpop.f32.mrb[26].mxu0 }
 0x4b8   : > { %2307 = vrot.lane.b32.xlu1 %v2306_v30, %s2438_s16  ;;  %v2184_v33 = vpop.f32.mrb[27].mxu0  ;;  %v1537_v32 = vsub.s32 2, %v2573_v13 }
 0x4ba   : > { %v1538_v33 = vrot.slane %v2577_v15, %v1537_v32 }
 0x4bd   : > { %v1309_v35 = vpop.f32.mrb[28].mxu0 }
 0x4be   : > { %v2311_v36 = vpack.i.bf16 %v1309_v35, %v848_v14  ;;  %v2195_v37 = vpop.f32.mrb[29].mxu0 }
 0x4bf   : > { %v1312_v38 = vpop.f32.mrb[30].mxu0 }
 0x4c0   : > { %2312 = vrot.lane.b32.xlu1 %v2311_v36, %s2439_s23  ;;  %v2196_v39 = vpop.f32.mrb[31].mxu0 }
 0x4c5   : > { %v1420_v40 = vpop.f32.mrb[32].mxu0 }
 0x4c6   : > { %v2316_v41 = vpack.i.bf16 %v1420_v40, %v959_v19  ;;  %v2207_v42 = vpop.f32.mrb[33].mxu0  ;;  %v1544_v40 = vrot.slane %v2577_v15, %v1543_v34 }
 0x4c7   : > { %v1423_v43 = vpop.f32.mrb[34].mxu0 }
 0x4c8   : > { %2317 = vrot.lane.b32.xlu0 %v2316_v41, %s2440_s12  ;;  %v2208_v44 = vpop.f32.mrb[35].mxu0 }
 0x52a   : > { %v2308_v45 = vpop.permute.xlu1 %2307 }
 0x52b   : > { %v2310_v47 = vunpack.i.h.bf16 %v2308_v45  ;;  %v2309_v49 = vunpack.i.l.bf16 %v2308_v45  ;;  %v2329_v45 = vld [vmem:[%s2536_s28 + $0x10] sm:$0xff]  }
 0x52d   : > { %v1438_v52 = vsel %vm523_vm3, %v1087_v25, %v2310_v47  ;;  %v977_v53 = vsel %vm523_vm3, %v626_v3, %v2309_v49  ;;  %v2327_v25 = vld [vmem:[%s2536_s28] sm:$0xff]   ;;  %v1554_v47 = vsub.s32 4, %v2573_v13 }
 0x52f   : > { %v1555_v49 = vrot.slane %v2577_v15, %v1554_v47 }
 0x532   : > { %v2313_v46 = vpop.permute.xlu1 %2312 }
 0x533   : > { %v2315_v50 = vunpack.i.h.bf16 %v2313_v46  ;;  %v2314_v48 = vunpack.i.l.bf16 %v2313_v46  ;;  %v2330_v46 = vld [vmem:[%s2536_s28 + $0x18] sm:$0xff]  }
 0x535   : > { %v1439_v56 = vsel %vm978_vm5, %v1438_v52, %v2315_v50  ;;  %v979_v57 = vsel %vm978_vm5, %v977_v53, %v2314_v48 }
 0x53a   : > { %v2318_v51 = vpop.permute.xlu0 %2317 }
 0x53b   : > { %v2320_v54 = vunpack.i.h.bf16 %v2318_v51  ;;  %v2319_v55 = vunpack.i.l.bf16 %v2318_v51 }
 0x53d   : > { %v1440_v58 = vsel %vm980_vm6, %v1439_v56, %v2320_v54  ;;  %v981_v59 = vsel %vm980_vm6, %v979_v57, %v2319_v55 }
 0x53e   : > { %v1441_v60 = vpack.c.bf16 %v1440_v58, %v981_v59  ;;  %v1625_v58 = vsub.s32 5, %v2573_v13 }
 0x540   : > { %2214 = vmatmul.mubr.msk.bf16.vlgmr.msra.gmra.mrb[32].mxu1 %vm474_vm2, %v1441_v60 }
 0x541   : > { %2233 = vmatprep.mubr.msk.bf16.mxu1 %vm2426_vm1, %v2425_v7  ;;  %2226 = vmatpush3.bf16.msra.mxu1 %v2327_v25  ;;  %v1726_v25 = vsub.s32 6, %v2573_v13 }
 0x542   : > { %2227 = vmatprep.subr.bf16.mxu1 %v2425_v7 }
 0x545   : > { %2228 = vmatpush3.bf16.msra.mxu1 %v2328_v26  ;;  %v1732_v26 = vsub.s32 7, %v2573_v13 }
 0x546   : > { %2229 = vmatprep.subr.bf16.mxu1 %v2425_v7 }
 0x549   : > { %2230 = vmatpush3.bf16.msra.mxu1 %v2329_v45 }
 0x54a   : > { %2231 = vmatprep.subr.bf16.mxu1 %v2425_v7  ;;  %v1626_v7 = vrot.slane %v2577_v15, %v1625_v58 }
 0x54d   : > { %2232 = vmatpush3.bf16.msra.mxu1 %v2330_v46 }
 0x613   : > { %v1499_v63 = vpop.f32.mrb[32].mxu1 }
 0x614   : > { %v1500_v0 = vadd.f32 %v1499_v63, %v1449_v62  ;;  %v2215_v21 = vpop.f32.mrb[33].mxu1 }
 0x615   : > { %v1502_v1 = vpop.f32.mrb[34].mxu1 }
 0x616   : > { %v1503_v3 = vadd.f32 %v1502_v1, %v1449_v62  ;;  %v2216_v4 = vpop.f32.mrb[35].mxu1  ;;  %v1506_v5 = vadd.f32 %v1500_v0, %v2560_v9 }
 0x618   : > { %v1508_v2 = vsel %vm474_vm2, %v1506_v5, 0.0  ;;  %v1507_v6 = vadd.f32 %v1503_v3, %v2562_v10 }
 0x619   : > { %1509 = vadd.xlane.f32.xlu1 %v1508_v2 }
 0x61a   : > { %v1511_v8 = vsel %vm474_vm2, %v1507_v6, 0.0 }
 0x61b   : > { %1512 = vadd.xlane.f32.xlu0 %v1511_v8 }
 0x6a6   : > { %v1510_v11 = vpop.xlane.xlu1 %1509 }
 0x6a7   : > { %v1515_v12 = vmul.f32 0.03125, %v1510_v11 }
 0x6a8   : > { %v1513_v14 = vpop.xlane.xlu0 %1512 }
 0x6a9   : > { %v1517_v16 = vsub.f32 %v1506_v5, %v1515_v12  ;;  %v1516_v17 = vmul.f32 0.03125, %v1513_v14 }
 0x6ab   : > { %v1518_v18 = vsub.f32 %v1507_v6, %v1516_v17  ;;  %v1519_v19 = vmul.f32 %v1517_v16, %v1517_v16 }
 0x6ad   : > { %v1521_v9 = vsel %vm474_vm2, %v1519_v19, 0.0  ;;  %v1520_v20 = vmul.f32 %v1518_v18, %v1518_v18 }
 0x6ae   : > { %1522 = vadd.xlane.f32.xlu0 %v1521_v9 }
 0x6af   : > { %v1524_v10 = vsel %vm474_vm2, %v1520_v20, 0.0 }
 0x6b0   : > { %1525 = vadd.xlane.f32.xlu1 %v1524_v10 }
 0x73b   : > { %v1523_v27 = vpop.xlane.xlu0 %1522 }
 0x73c   : > { %v1527_v28 = vmul.f32 0.03125, %v1523_v27  ;;  %v1727_v27 = vrot.slane %v2577_v15, %v1726_v25 }
 0x73d   : > { %v1526_v29 = vpop.xlane.xlu1 %1525 }
 0x73e   : > { %v1529_v24 = vadd.f32 1e-05, %v1527_v28  ;;  %v1528_v30 = vmul.f32 0.03125, %v1526_v29  ;;  %v1733_v29 = vrot.slane %v2577_v15, %v1732_v26  ;;  %v1762_v15 = vld [vmem:[%s2869_s7 + $0x8] sm:$0xff] (!%p2043_p6) }
 0x740   : > { %2363 = vrsqrt.f32 %v1529_v24  ;;  %v1530_v31 = vadd.f32 1e-05, %v1528_v30 }
 0x742   : > { %2365 = vrsqrt.f32 %v1530_v31 }
 0x74a   : > { %v2364_v35 = vpop.eup %2363 }
 0x74b   : > { %v1533_v36 = vmul.f32 %v2364_v35, %v1517_v16 }
 0x74c   : > { %v2366_v37 = vpop.eup %2365 }
 0x74d   : > { %v1539_v38 = vmul.f32 %v1538_v33, %v1533_v36  ;;  %v1534_v39 = vmul.f32 %v2366_v37, %v1518_v18  ;;  %v1761_v36 = vld [vmem:[%s2869_s7] sm:$0xff] (!%p2043_p6)  ;;  %v1763_v37 = vld [vmem:[%s2869_s7 + $0x10] sm:$0xff] (!%p2043_p6) }
 0x74f   : > { %v1540_v41 = vmul.f32 %v1538_v33, %v1534_v39  ;;  %v1545_v42 = vadd.f32 %v1544_v40, %v1539_v38  ;;  %v2441_v38 = vmov (!%p2043_p6), 0.0|0.0   ;;  %v2249_v39 = vpack.c.bf16 (!%p2043_p6), %v1762_v15, %v1761_v36 }
 0x750   : > { %2248 = vmatprep.subr.bf16.mxu0 (!%p2043_p6), %v2441_v38 }
 0x751   : > { %v1546_v43 = vadd.f32 %v1544_v40, %v1540_v41  ;;  %v1764_v40 = vld [vmem:[%s2869_s7 + $0x18] sm:$0xff] (!%p2043_p6)  ;;  %v2443_v41 = vmov (!%p2043_p6), 0.0  }
 0x752   : > { %v2252_v46 = vpack.c.bf16 (!%p2043_p6), %v1764_v40, %v1763_v37 }
 0x753   : > { %v1547_v44 = vpack.c.bf16 %v1546_v43, %v1545_v42 }
 0x755   : > { %2222 = vmatmul.mubr.msk.bf16.vlgmr.msra.gmra.mrb[36].mxu0 %vm474_vm2, %v1547_v44 }
 0x756   : > { %2245 = vmatprep.mubr.msk.f32.mxu0 (!%p2043_p6), %vm2442_vm8, %v2443_v41  ;;  %2250 = vmatpush3.bf16.msra.mxu0 (!%p2043_p6), %v2249_v39 }
 0x757   : > { %2251 = vmatprep.subr.bf16.mxu0 (!%p2043_p6), %v2441_v38 }
 0x75a   : > { %2253 = vmatpush3.bf16.msra.mxu0 (!%p2043_p6), %v2252_v46 }
 0x828   : > { %v1605_v50 = vpop.f32.mrb[36].mxu0 }
 0x829   : > { %v1606_v48 = vadd.f32 %v1605_v50, %v1555_v49  ;;  %v2223_v51 = vpop.f32.mrb[37].mxu0 }
 0x82a   : > { %v1608_v52 = vpop.f32.mrb[38].mxu0 }
 0x82b   : > { %v1609_v53 = vadd.f32 %v1608_v52, %v1555_v49  ;;  %v2224_v54 = vpop.f32.mrb[39].mxu0  ;;  %v1612_v55 = vmax.f32 %v1606_v48, 0.0 }
 0x82d   : > { %v1613_v56 = vmax.f32 %v1609_v53, 0.0 }
 0x82f   : > { %v1614_v57 = vpack.c.bf16 %v1613_v56, %v1612_v55 }
 0x831   : > { %2234 = vmatmul.mubr.msk.bf16.vlgmr.msra.gmra.mrb[36].mxu1 %vm1651_vm7, %v1614_v57 }
 0x904   : > { %v1689_v59 = vpop.f32.mrb[36].mxu1 }
 0x905   : > { %v1690_v60 = vadd.f32 %v1689_v59, %v1626_v7  ;;  %v2235_v61 = vpop.f32.mrb[37].mxu1  ;;  %v2444_v59 = vmov (!%p2043_p6), 1966171168  }
 0x906   : > { %v1692_v62 = vpop.f32.mrb[38].mxu1 }
 0x907   : > { %v1693_v63 = vadd.f32 %v1692_v62, %v1626_v7  ;;  %v2236_v0 = vpop.f32.mrb[39].mxu1  ;;  %v1696_v21 = vadd.f32 %v1690_v60, %v1545_v42  ;;  %v1847_v60 = vunpack.c.l.s4 (!%p2043_p6), %v2444_v59  ;;  %v2044_v62 = vld [vmem:[%s2870_s8] ss:$0 sm:$0xff] (!%p2043_p6) }
 0x909   : > { %v1698_v1 = vsel %vm474_vm2, %v1696_v21, 0.0  ;;  %v1697_v3 = vadd.f32 %v1693_v63, %v1546_v43  ;;  %v1848_v61 = vunpack.c.0.s8 (!%p2043_p6), %v1847_v60 }
 0x90a   : > { %1699 = vadd.xlane.f32.xlu0 %v1698_v1 }
 0x90b   : > { %v1701_v4 = vsel %vm474_vm2, %v1697_v3, 0.0  ;;  %v1851_v63 = vsub.s32 (!%p2043_p6), %v1848_v61, %v2573_v13 }
 0x90c   : > { %1702 = vadd.xlane.f32.xlu1 %v1701_v4 }
 0x997   : > { %v1700_v5 = vpop.xlane.xlu0 %1699 }
 0x998   : > { %v1704_v2 = vmul.f32 0.03125, %v1700_v5 }
 0x999   : > { %v1703_v6 = vpop.xlane.xlu1 %1702 }
 0x99a   : > { %v1706_v8 = vsub.f32 %v1696_v21, %v1704_v2  ;;  %v1705_v11 = vmul.f32 0.03125, %v1703_v6 }
 0x99c   : > { %v1707_v12 = vsub.f32 %v1697_v3, %v1705_v11  ;;  %v1708_v14 = vmul.f32 %v1706_v8, %v1706_v8 }
 0x99e   : > { %v1710_v16 = vsel %vm474_vm2, %v1708_v14, 0.0  ;;  %v1709_v17 = vmul.f32 %v1707_v12, %v1707_v12 }
 0x99f   : > { %1711 = vadd.xlane.f32.xlu0 %v1710_v16 }
 0x9a0   : > { %v1713_v18 = vsel %vm474_vm2, %v1709_v17, 0.0 }
 0x9a1   : > { %1714 = vadd.xlane.f32.xlu1 %v1713_v18 }
 0xa2c   : > { %v1712_v19 = vpop.xlane.xlu0 %1711 }
 0xa2d   : > { %v1716_v9 = vmul.f32 0.03125, %v1712_v19 }
 0xa2e   : > { %v1715_v20 = vpop.xlane.xlu1 %1714 }
 0xa2f   : > { %v1718_v10 = vadd.f32 1e-05, %v1716_v9  ;;  %v1717_v22 = vmul.f32 0.03125, %v1715_v20 }
 0xa31   : > { %2367 = vrsqrt.f32 %v1718_v10  ;;  %v1719_v23 = vadd.f32 1e-05, %v1717_v22 }
 0xa33   : > { %2369 = vrsqrt.f32 %v1719_v23 }
 0xa3b   : > { %v2368_v28 = vpop.eup %2367 }
 0xa3c   : > { %v1722_v24 = vmul.f32 %v2368_v28, %v1706_v8 }
 0xa3d   : > { %v2370_v30 = vpop.eup %2369 }
 0xa3e   : > { %v1728_v31 = vmul.f32 %v1727_v27, %v1722_v24  ;;  %v1723_v32 = vmul.f32 %v2370_v30, %v1707_v12  ;;  %1741 = sbr.rel (%p2043_p6) target bundleno = 2865 (0xb31), region = 64 }
 0xa40   : > { %v1734_v33 = vadd.f32 %v1733_v29, %v1728_v31  ;;  %v1729_v34 = vmul.f32 %v1727_v27, %v1723_v32 }
 0xa42   : > { %1736 = vst.msk [vmem:[#allocation2] sm:$0xff] %vm474_vm2, %v1734_v33  ;;  %v1735_v35 = vadd.f32 %v1733_v29, %v1729_v34  ;;  %v1742_v42 = vsel (!%p2043_p6), %vm474_vm2, %v1734_v33, 0.0 }
 0xa43   : > { %v1743_v44 = vrot.slane (!%p2043_p6), %v1742_v42, 4 }
 0xa44   : > { %1737 = vst.msk [vmem:[#allocation2 + $0x8] sm:$0xff] %vm474_vm2, %v1735_v35  ;;  %v1751_v43 = vsel (!%p2043_p6), %vm474_vm2, %v1735_v35, 0.0 }
 0xa45   : > { %v1752_v45 = vrot.slane %v1751_v43, 4  ;;  %v1744_v47 = vadd.f32 %v1743_v44, %v1742_v42 }
 0xa47   : > { %v1753_v49 = vadd.f32 %v1752_v45, %v1751_v43  ;;  %v1745_v50 = vrot.slane %v1744_v47, 2 }
 0xa49   : > { %v1754_v48 = vrot.slane %v1753_v49, 2  ;;  %v1746_v51 = vadd.f32 %v1745_v50, %v1744_v47 }
 0xa4b   : > { %v1755_v52 = vadd.f32 %v1754_v48, %v1753_v49  ;;  %v1747_v53 = vrot.slane %v1746_v51, 1 }
 0xa4d   : > { %v1756_v54 = vrot.slane %v1755_v52, 1  ;;  %v1748_v55 = vadd.f32 %v1747_v53, %v1746_v51 }
 0xa4f   : > { %v1757_v56 = vadd.f32 %v1756_v54, %v1755_v52  ;;  %v1750_v57 = vmul.f32 0.125, %v1748_v55 }
 0xa51   : > { %v1758_v58 = vmul.f32 0.125, %v1757_v56 }
 0xa53   : > { %v1760_v7 = vsel %vm1759_vm9, %v1750_v57, %v1758_v58 }
 0xa54   : > { %2246 = vmatmul.mubr.msk.f32.vlgmr.msra.gmra.mrb[0].mxu0 %vm474_vm2, %v1760_v7 }
 0xb27   : > { %v1841_v0 = vpop.f32.mrb[0].mxu0 }
 0xb28   : > { %v1842_v21 = vadd.f32 %v2044_v62, %v1841_v0  ;;  %v2247_v1 = vpop.f32.mrb[1].mxu0 }
 0xb2a   : > { %v1852_v3 = vrot.slane %v1842_v21, %v1851_v63 }
 0xb2c   : > { %v1853_v4 = vcombine.high %v1852_v3, %v1852_v3  ;;  %v1860_v5 = vrot.slane %v1852_v3, %v1851_v63 }
 0xb2e   : > { %v1867_v2 = vrot.slane %v1853_v4, %v1851_v63  ;;  %1871 = vst.msk [vmem:[#allocation3] sm:$0x1] %vm1870_vm10, %v1860_v5 }
 0xb30   : > { %1872 = vst.msk [vmem:[#allocation3 + $0x1] sm:$0x1] %vm1870_vm10, %v1867_v2 }
 0xb31 PF: > { %s2873_s29 = sadd.s32 4294967295, %s2423_s11   ;;  %s2445_s18 = smov [#allocation3]  }
 0xb32   : > { %p2825_p7 = scmp.eq.s32.totalorder %s2873_s29, 1  ;;  %s1882_s20 = sshll.u32 %s2445_s18, 4  ;;  %s1883_s20 = int_to_ptr.vmem [resolvable:$true] %s1882_s20 }
 0xb33   : > { %s2371_s15 = scalar_lea.vmem %s1883_s20, 32  ;;  %p2378_p11 = scmp.lt.s32.totalorder %s1883_s20, %s1883_s20 }
 0xb34   : > { %p2372_p8 = scmp.ne.s32.totalorder %s1883_s20, %s2371_s15  ;;  %p2379_p12 = scmp.lt.s32.totalorder %s2371_s15, %s2371_s15 }
 0xb36   : > { %p2373_p9 = pnand %p2372_p8, %p2825_p7  ;;  %p2380_p13 = por %p2379_p12, %p2378_p11 }
 0xb38   : > { %p2374_p10 = pneg %p2373_p9 }
 0xb3a   : > { %p2381_p0 = pnand %p2380_p13, %p2374_p10 }
 0xb3c   : > { %2384 = shalt.err (!%p2381_p0)
}
 0xb3d   : > { %s2385_s12 = scalar_lea.hbm %s2871_s9, 32 }
 0xb3e   : > { %p2386_p1 = scmp.ne.s32.totalorder %s2871_s9, %s2385_s12  ;;  %p2391_p4 = scmp.lt.u32.totalorder %s2385_s12, %s2871_s9 }
 0xb40   : > { %p2387_p2 = pnand %p2386_p1, %p2825_p7 }
 0xb42   : > { %p2388_p3 = pneg %p2387_p2 }
 0xb44   : > { %p2393_p5 = pnand %p2391_p4, %p2388_p3 }
 0xb46   : > { %2396 = shalt.err (!%p2393_p5)
}
 0xb47   : > { %s2446_s14 = smov 1  }
 0xb48   : > { %2255 = dma.vmem_to_hbm [thread:$0]  (%p2825_p7), %s1883_s20, 32, %s2871_s9, [#allocation4], %s2439_s23, %s2439_s23, %s2446_s14  }
 0xb49   : > { %2410 = dma.done.wait (%p2825_p7), [#allocation4], 32  }
 0xb4a   : > { %2412 = vsyncadd (%p2825_p7), [#allocation4], 4294967264 }
 0xb4b PF: > { %s20_s11 = sadd.s32 1, %s2423_s11   ;;  %s2875_s26 = sld [smem:[#allocation6_spill]] }
 0xb4c   : > { %p17_p6 = scmp.ge.s32.totalorder %s20_s11, 4   ;;  %s2876_s30 = smov %s2419_s10 }
 0xb4e   :  { %19 = sbr.rel (!%p17_p6) target bundleno = 2 (0x2), region = 107 }
 0xb51   : > { %s2877_s10 = smov %s2875_s26 }
 0xb55   :  { %1898 = vsyncpa [#allocation4], 1 }
 0xb56   :  { %1900 = vsyncpa [#allocation4 + $0x1], 1 }

</bundles_post_ra>
